<compile_context>
chip_gen: v6e
topology: v6e:2x2x1
jax: 0.10.0
libtpu: 0.0.40
codegen_flags: <defaults>
</compile_context>

<pallas_src>
import functools

import jax
import jax.numpy as jnp
from jax.experimental import pallas as pl
from jax.experimental.pallas import tpu as pltpu

LN_EPS = 1e-5                                    # nn.LayerNorm default
MASK_VALUE = float(jnp.finfo(jnp.float32).min)   # finite; ~= -torch.finfo(f32).max


def _transformer_block_kernel(x_ref, mrow_ref, mcol_ref,
                              ln1g_ref, ln1b_ref,
                              wqkv_ref, wo_ref, bo_ref,
                              ln2g_ref, ln2b_ref,
                              w1_ref, b1_ref, w2_ref, b2_ref,
                              o_ref, *, heads, scale, causal, exact_gelu):
    x = x_ref[...]                                  # (bb, n, d) f32
    bb, n, d = x.shape
    dh = d // heads
    bn = bb * n

    # ---------------- Residual(PreNorm(SelfAttention)) ----------------
    mu = jnp.mean(x, axis=-1, keepdims=True)
    var = jnp.mean(jnp.square(x - mu), axis=-1, keepdims=True)
    xn = (x - mu) * jax.lax.rsqrt(var + LN_EPS)
    xn = xn * ln1g_ref[...] + ln1b_ref[...]

    # Fused QKV: one lane-dense (bn, d) @ (d, 3d) MXU matmul, f32 accumulate.
    xn2d = xn.reshape(bn, d).astype(jnp.bfloat16)
    qkv = jnp.dot(xn2d, wqkv_ref[...], preferred_element_type=jnp.float32)   # (bn, 3d)
    qb = (qkv[:, 0 * d:1 * d] * scale).astype(jnp.bfloat16)   # scale folded into q
    kb = qkv[:, 1 * d:2 * d].astype(jnp.bfloat16)
    vb = qkv[:, 2 * d:3 * d].astype(jnp.bfloat16)

    # Pairwise source mask (+ optional causal mask).  Finite fill keeps fully
    # padded query rows NaN-free (matches torch masked_fill(-finfo.max)+softmax).
    pair_ok = (mcol_ref[...] * mrow_ref[...]) > 0.5             # (bb, n, n)
    if causal:
        row_i = jax.lax.broadcasted_iota(jnp.int32, (n, n), 0)
        col_j = jax.lax.broadcasted_iota(jnp.int32, (n, n), 1)
        allowed = pair_ok & (col_j <= row_i)[None]
    else:
        allowed = pair_ok

    # Per-head attention with leading-batch 3-D einsums; output projection is
    # accumulated into a single f32 buffer (no heads-wide f32 intermediate).
    # TODO(synk): flash-style KV tiling (online softmax over a kv grid axis)
    # would bound the (bb, n, n) score buffer for very long sequences.
    acc = jnp.zeros((bn, d), jnp.float32)
    for h in range(heads):
        sl = slice(h * dh, (h + 1) * dh)
        qh = qb[:, sl].reshape(bb, n, dh)
        kh = kb[:, sl].reshape(bb, n, dh)
        vh = vb[:, sl].reshape(bb, n, dh)
        scores = jnp.einsum('bie,bje->bij', qh, kh,
                            preferred_element_type=jnp.float32)       # (bb, n, n)
        scores = jnp.where(allowed, scores, MASK_VALUE)
        m = jnp.max(scores, axis=-1, keepdims=True)
        p = jnp.exp(scores - m)
        denom = jnp.sum(p, axis=-1, keepdims=True)
        # approx reciprocal runs on the EUP slot; ~1e-4 relative deviation from
        # an exact softmax (documented, inference-grade).
        attn = p * pl.reciprocal(denom, approx=True)
        # TODO(synk): attention dropout omitted (p=0.0 / eval mode -> identity)
        ctx = jnp.einsum('bij,bje->bie', attn.astype(jnp.bfloat16), vh,
                         preferred_element_type=jnp.float32)           # (bb, n, dh)
        acc = acc + jnp.dot(ctx.reshape(bn, dh).astype(jnp.bfloat16), wo_ref[h],
                            preferred_element_type=jnp.float32)        # (bn, d)

    x = x + acc.reshape(bb, n, d) + bo_ref[...]

    # ---------------- Residual(PreNorm(FeedForward)) ----------------
    mu2 = jnp.mean(x, axis=-1, keepdims=True)
    var2 = jnp.mean(jnp.square(x - mu2), axis=-1, keepdims=True)
    xn2 = (x - mu2) * jax.lax.rsqrt(var2 + LN_EPS)
    xn2 = xn2 * ln2g_ref[...] + ln2b_ref[...]

    h1 = jnp.dot(xn2.reshape(bn, d).astype(jnp.bfloat16), w1_ref[...],
                 preferred_element_type=jnp.float32) + b1_ref[...]
    # TODO(synk): nn.GELU default is the exact erf form; tanh approximation is
    # the default here (v5e EUP pressure + guaranteed Mosaic lowering).
    h1 = jax.nn.gelu(h1, approximate=not exact_gelu)
    # TODO(synk): ff dropout omitted (p=0.0 / eval mode -> identity)
    ff = jnp.dot(h1.astype(jnp.bfloat16), w2_ref[...],
                 preferred_element_type=jnp.float32) + b2_ref[...]

    o_ref[...] = x + ff.reshape(bb, n, d)


def _vmem_budget_bytes():
    cap = 128 << 20
    try:
        cap = int(pltpu.get_tpu_info().vmem_capacity_bytes)   # 64 MiB on v7x
    except Exception:
        pass
    # leave ~25% headroom for compiler scratch / uncounted pipeline buffers
    return max(32 << 20, min(int(cap * 0.75), cap - (8 << 20)))


def _estimate_vmem_bytes(bb, n, d, dff, heads):
    f32, bf16, lane = 4, 2, 128
    bn = bb * n
    dh = d // heads
    n_sub = -(-n // 8) * 8
    n_lane = -(-n // lane) * lane
    d_lane = -(-d // lane) * lane
    # Pallas-pipelined I/O blocks (double buffered)
    io = 2 * f32 * (2 * bb * n_sub * d_lane        # x in + out
                    + bb * 8 * n_lane              # key-side mask
                    + bb * n_sub * lane)           # query-side mask (lane pad)
    # weights (constant index_map; still double buffered by default)
    # TODO(synk): pipeline_mode=pl.Buffered(1) would halve this once single
    # buffering of constant blocks is verified on the target jaxlib.
    wts = 2 * (bf16 * (3 * d * d + d * d + 2 * d * dff) + f32 * (6 * d + dff))
    # attention-phase working set (one head of scores live at a time)
    attn_ws = (f32 * 2 * bn * d            # x, xn
               + bf16 * bn * d             # xn bf16
               + f32 * bn * 3 * d          # fused qkv (f32 accumulate)
               + bf16 * bn * 3 * d         # q/k/v bf16
               + 1 * bb * n * n            # allowed mask (bool)
               + f32 * 3 * bb * n * n      # scores / exp / attn
               + bf16 * bb * n * n         # attn bf16
               + f32 * bn * dh             # ctx (one head)
               + f32 * bn * d)             # output-projection accumulator
    # feed-forward-phase working set
    ff_ws = (f32 * 2 * bn * d + bf16 * bn * d
             + f32 * bn * dff + bf16 * bn * dff + f32 * bn * d)
    return int(io + wts + max(attn_ws, ff_ws) + (4 << 20))


def _pick_batch_block(b, n, d, dff, heads, budget):
    # keep >=2 grid programs when b >= 2 so the "parallel" batch axis can be
    # sharded across v7x's two TensorCores (harmless on 1-TC v5e/v6e).
    cap = b if b < 2 else max(1, b // 2)
    best = 1
    for bb in range(1, b + 1):
        if b % bb != 0 or bb > cap:
            continue
        if _estimate_vmem_bytes(bb, n, d, dff, heads) <= budget:
            best = bb
    return best


def transformer_block(x, mask, p, heads, scale, batch_block=None,
                      causal=True, exact_gelu=False):
    b, n, d = x.shape
    dff = p["w1"].shape[1]
    dh = d // heads
    budget = _vmem_budget_bytes()
    bb = (_pick_batch_block(b, n, d, dff, heads, budget)
          if batch_block is None else batch_block)
    assert b % bb == 0
    nblk = b // bb

    mrow = mask[:, None, :]   # (b, 1, n)  key-side mask
    mcol = mask[:, :, None]   # (b, n, 1)  query-side mask

    # bf16 weights prepared in plain JAX (outside the kernel); no replication.
    wqkv = p["wqkv"].astype(jnp.bfloat16)                        # (d, 3d) fused
    wo = p["wo"].reshape(heads, dh, d).astype(jnp.bfloat16)      # per-head row slabs
    w1 = p["w1"].astype(jnp.bfloat16)
    w2 = p["w2"].astype(jnp.bfloat16)

    kernel = functools.partial(_transformer_block_kernel, heads=heads,
                               scale=scale, causal=causal, exact_gelu=exact_gelu)

    def wspec(shape):
        return pl.BlockSpec(shape, lambda i, _s=shape: (0,) * len(_s))

    vmem_bytes = min(max(_estimate_vmem_bytes(bb, n, d, dff, heads), 32 << 20),
                     budget)

    return pl.pallas_call(
        kernel,
        out_shape=jax.ShapeDtypeStruct((b, n, d), jnp.float32),
        grid=(nblk,),
        in_specs=[
            pl.BlockSpec((bb, n, d), lambda i: (i, 0, 0)),   # x
            pl.BlockSpec((bb, 1, n), lambda i: (i, 0, 0)),   # mask (key axis)
            pl.BlockSpec((bb, n, 1), lambda i: (i, 0, 0)),   # mask (query axis)
            wspec((1, d)), wspec((1, d)),                    # ln1 gamma / beta
            wspec((d, 3 * d)),                               # fused wqkv (bf16)
            wspec((heads, dh, d)), wspec((1, d)),            # wo (per-head), bo
            wspec((1, d)), wspec((1, d)),                    # ln2 gamma / beta
            wspec((d, dff)), wspec((1, dff)),                # w1, b1
            wspec((dff, d)), wspec((1, d)),                  # w2, b2
        ],
        out_specs=pl.BlockSpec((bb, n, d), lambda i: (i, 0, 0)),
        compiler_params=pltpu.CompilerParams(
            dimension_semantics=("parallel",),
            vmem_limit_bytes=vmem_bytes),
    )(x, mrow, mcol,
      p["ln1_g"], p["ln1_b"], wqkv, wo, p["bo"],
      p["ln2_g"], p["ln2_b"], w1, p["b1"], w2, p["b2"])


def init_block_params(key, dim, ff_mult):
    ks = jax.random.split(key, 6)
    s = 0.02
    return {
        "ln1_g": jnp.ones((1, dim), jnp.float32),
        "ln1_b": jnp.zeros((1, dim), jnp.float32),
        "wqkv": (jax.random.normal(ks[0], (dim, 3 * dim)) * s).astype(jnp.float32),
        "wo":   (jax.random.normal(ks[1], (dim, dim)) * s).astype(jnp.float32),
        "bo":   (jax.random.normal(ks[2], (1, dim)) * s).astype(jnp.float32),
        "ln2_g": jnp.ones((1, dim), jnp.float32),
        "ln2_b": jnp.zeros((1, dim), jnp.float32),
        "w1":   (jax.random.normal(ks[3], (dim, dim * ff_mult)) * s).astype(jnp.float32),
        "b1":   (jax.random.normal(ks[4], (1, dim * ff_mult)) * s).astype(jnp.float32),
        "w2":   (jax.random.normal(ks[5], (dim * ff_mult, dim)) * s).astype(jnp.float32),
        "b2":   jnp.zeros((1, dim), jnp.float32),
    }


def init_encoder_params(key, dim, depth, retrieval_encoder_depth, ff_mult):
    assert depth > retrieval_encoder_depth
    keys = jax.random.split(key, depth + 1)
    cls = (jax.random.normal(keys[0], (1, dim)) * 0.02).astype(jnp.float32)
    head = [init_block_params(keys[1 + i], dim, ff_mult)
            for i in range(retrieval_encoder_depth)]
    tail = [init_block_params(keys[1 + retrieval_encoder_depth + i], dim, ff_mult)
            for i in range(depth - retrieval_encoder_depth)]
    return {"cls": cls, "head": head, "tail": tail}


def encoder_forward(params, x, src_mask=None, return_embed_only=False, heads=8):
    b, n0, d = x.shape
    # NOTE: scale uses the full model dim (matches marge_pytorch SelfAttention).
    scale = d ** -0.5
    cls_tok = jnp.broadcast_to(params["cls"][None], (b, 1, d))   # 'n d -> b n d'
    x = jnp.concatenate([cls_tok, x], axis=1)                    # (b, n0+1, d)
    if src_mask is None:
        mask = jnp.ones((b, n0 + 1), jnp.float32)
    else:
        mask = jnp.concatenate(
            [jnp.ones((b, 1), jnp.float32), src_mask.astype(jnp.float32)], axis=1)
    for p in params["head"]:
        x = transformer_block(x, mask, p, heads, scale)
    cls_tokens = x[:, 0]
    if return_embed_only:
        return cls_tokens
    for p in params["tail"]:
        x = transformer_block(x, mask, p, heads, scale)
    return x, cls_tokens


if __name__ == "__main__":
    dim, depth, retrieval_depth, heads, ff_mult = 32, 2, 1, 8, 4
    batch, seq = 2, 8

    key = jax.random.PRNGKey(0)
    kp, kx = jax.random.split(key, 2)
    params = init_encoder_params(kp, dim, depth, retrieval_depth, ff_mult)
    x = jax.random.normal(kx, (batch, seq, dim), jnp.float32)
    # partially masked second example exercises the padded-row (finite fill) path
    src_mask = jnp.array([[True] * seq,
                          [True] * (seq - 3) + [False] * 3])

    fwd = jax.jit(lambda prm, xx, mm: encoder_forward(prm, xx, mm, heads=heads))
    out, cls_tokens = fwd(params, x, src_mask)
    jax.block_until_ready((out, cls_tokens))

    assert out.shape == (batch, seq + 1, dim)
    assert cls_tokens.shape == (batch, dim)
    assert bool(jnp.all(jnp.isfinite(out))) and bool(jnp.all(jnp.isfinite(cls_tokens)))
    print("KERNEL_OK")
</pallas_src>

<mosaic_0001>
module attributes {stable_mosaic.version = 11 : i64} {
  func.func @_transformer_block_kernel(%arg0: i32, %arg1: memref<1x9x32xf32, #tpu.memory_space<vmem>>, %arg2: memref<1x1x9xf32, #tpu.memory_space<vmem>>, %arg3: memref<1x9x1xf32, #tpu.memory_space<vmem>>, %arg4: memref<1x32xf32, #tpu.memory_space<vmem>>, %arg5: memref<1x32xf32, #tpu.memory_space<vmem>>, %arg6: memref<32x96xbf16, #tpu.memory_space<vmem>>, %arg7: memref<8x4x32xbf16, #tpu.memory_space<vmem>>, %arg8: memref<1x32xf32, #tpu.memory_space<vmem>>, %arg9: memref<1x32xf32, #tpu.memory_space<vmem>>, %arg10: memref<1x32xf32, #tpu.memory_space<vmem>>, %arg11: memref<32x128xbf16, #tpu.memory_space<vmem>>, %arg12: memref<1x128xf32, #tpu.memory_space<vmem>>, %arg13: memref<128x32xbf16, #tpu.memory_space<vmem>>, %arg14: memref<1x32xf32, #tpu.memory_space<vmem>>, %arg15: memref<1x9x32xf32, #tpu.memory_space<vmem>>) attributes {dimension_semantics = [#tpu.dimension_semantics<parallel>], iteration_bounds = array<i64: 2>, scalar_prefetch = 0 : i64, scratch_operands = 0 : i64, tpu.core_type = #tpu.core_type<tc>, window_params = [{transform_indices = @transform_0, window_bounds = array<i64: 1, 9, 32>}, {transform_indices = @transform_1, window_bounds = array<i64: 1, 1, 9>}, {transform_indices = @transform_2, window_bounds = array<i64: 1, 9, 1>}, {pipeline_mode = #tpu.pipeline_mode<synchronous>, transform_indices = @transform_3, window_bounds = array<i64: 1, 32>}, {pipeline_mode = #tpu.pipeline_mode<synchronous>, transform_indices = @transform_4, window_bounds = array<i64: 1, 32>}, {pipeline_mode = #tpu.pipeline_mode<synchronous>, transform_indices = @transform_5, window_bounds = array<i64: 32, 96>}, {pipeline_mode = #tpu.pipeline_mode<synchronous>, transform_indices = @transform_6, window_bounds = array<i64: 8, 4, 32>}, {pipeline_mode = #tpu.pipeline_mode<synchronous>, transform_indices = @transform_7, window_bounds = array<i64: 1, 32>}, {pipeline_mode = #tpu.pipeline_mode<synchronous>, transform_indices = @transform_8, window_bounds = array<i64: 1, 32>}, {pipeline_mode = #tpu.pipeline_mode<synchronous>, transform_indices = @transform_9, window_bounds = array<i64: 1, 32>}, {pipeline_mode = #tpu.pipeline_mode<synchronous>, transform_indices = @transform_10, window_bounds = array<i64: 32, 128>}, {pipeline_mode = #tpu.pipeline_mode<synchronous>, transform_indices = @transform_11, window_bounds = array<i64: 1, 128>}, {pipeline_mode = #tpu.pipeline_mode<synchronous>, transform_indices = @transform_12, window_bounds = array<i64: 128, 32>}, {pipeline_mode = #tpu.pipeline_mode<synchronous>, transform_indices = @transform_13, window_bounds = array<i64: 1, 32>}, {transform_indices = @transform_14, window_bounds = array<i64: 1, 9, 32>}]} {
    %c0 = arith.constant 0 : index
    %c0_0 = arith.constant 0 : index
    %c0_1 = arith.constant 0 : index
    %0 = vector.load %arg1[%c0, %c0_0, %c0_1] : memref<1x9x32xf32, #tpu.memory_space<vmem>>, vector<1x9x32xf32>
    %cst = arith.constant dense<0.000000e+00> : vector<1x9xf32>
    %1 = vector.multi_reduction <add>, %0, %cst [2] : vector<1x9x32xf32> to vector<1x9xf32>
    %2 = vector.shape_cast %1 : vector<1x9xf32> to vector<1x9x1xf32>
    %cst_2 = arith.constant 3.200000e+01 : f32
    %3 = vector.broadcast %cst_2 : f32 to vector<1x9x1xf32>
    %4 = arith.divf %2, %3 : vector<1x9x1xf32>
    %5 = vector.broadcast %4 : vector<1x9x1xf32> to vector<1x9x32xf32>
    %6 = arith.subf %0, %5 : vector<1x9x32xf32>
    %7 = arith.mulf %6, %6 : vector<1x9x32xf32>
    %cst_3 = arith.constant dense<0.000000e+00> : vector<1x9xf32>
    %8 = vector.multi_reduction <add>, %7, %cst_3 [2] : vector<1x9x32xf32> to vector<1x9xf32>
    %9 = vector.shape_cast %8 : vector<1x9xf32> to vector<1x9x1xf32>
    %cst_4 = arith.constant 3.200000e+01 : f32
    %10 = vector.broadcast %cst_4 : f32 to vector<1x9x1xf32>
    %11 = arith.divf %9, %10 : vector<1x9x1xf32>
    %12 = vector.broadcast %4 : vector<1x9x1xf32> to vector<1x9x32xf32>
    %13 = arith.subf %0, %12 : vector<1x9x32xf32>
    %cst_5 = arith.constant 9.99999974E-6 : f32
    %14 = vector.broadcast %cst_5 : f32 to vector<1x9x1xf32>
    %15 = arith.addf %11, %14 : vector<1x9x1xf32>
    %16 = math.rsqrt %15 : vector<1x9x1xf32>
    %17 = vector.broadcast %16 : vector<1x9x1xf32> to vector<1x9x32xf32>
    %18 = arith.mulf %13, %17 : vector<1x9x32xf32>
    %c0_6 = arith.constant 0 : index
    %c0_7 = arith.constant 0 : index
    %19 = vector.load %arg4[%c0_6, %c0_7] : memref<1x32xf32, #tpu.memory_space<vmem>>, vector<1x32xf32>
    %20 = vector.shape_cast %19 : vector<1x32xf32> to vector<1x1x32xf32>
    %21 = vector.broadcast %20 : vector<1x1x32xf32> to vector<1x9x32xf32>
    %22 = arith.mulf %18, %21 : vector<1x9x32xf32>
    %c0_8 = arith.constant 0 : index
    %c0_9 = arith.constant 0 : index
    %23 = vector.load %arg5[%c0_8, %c0_9] : memref<1x32xf32, #tpu.memory_space<vmem>>, vector<1x32xf32>
    %24 = vector.shape_cast %23 : vector<1x32xf32> to vector<1x1x32xf32>
    %25 = vector.broadcast %24 : vector<1x1x32xf32> to vector<1x9x32xf32>
    %26 = arith.addf %22, %25 : vector<1x9x32xf32>
    %27 = vector.shape_cast %26 : vector<1x9x32xf32> to vector<9x32xf32>
    %28 = arith.truncf %27 : vector<9x32xf32> to vector<9x32xbf16>
    %c0_10 = arith.constant 0 : index
    %c0_11 = arith.constant 0 : index
    %29 = vector.load %arg6[%c0_10, %c0_11] : memref<32x96xbf16, #tpu.memory_space<vmem>>, vector<32x96xbf16>
    %cst_12 = arith.constant dense<0.000000e+00> : vector<9x96xf32>
    %30 = tpu.matmul %28, %29, %cst_12 {dimension_numbers = #tpu.dot_dimension_numbers<[1], [0], [0], [1], [0, 0, 1, 1], [], []>} : vector<9x32xbf16>, vector<32x96xbf16>, vector<9x96xf32> -> vector<9x96xf32>
    %31 = vector.extract_strided_slice %30 {offsets = [0, 0], sizes = [9, 32], strides = [1, 1]} : vector<9x96xf32> to vector<9x32xf32>
    %cst_13 = arith.constant 0.176776692 : f32
    %32 = vector.broadcast %cst_13 : f32 to vector<9x32xf32>
    %33 = arith.mulf %31, %32 : vector<9x32xf32>
    %34 = arith.truncf %33 : vector<9x32xf32> to vector<9x32xbf16>
    %35 = vector.extract_strided_slice %30 {offsets = [0, 32], sizes = [9, 32], strides = [1, 1]} : vector<9x96xf32> to vector<9x32xf32>
    %36 = arith.truncf %35 : vector<9x32xf32> to vector<9x32xbf16>
    %37 = vector.extract_strided_slice %30 {offsets = [0, 64], sizes = [9, 32], strides = [1, 1]} : vector<9x96xf32> to vector<9x32xf32>
    %38 = arith.truncf %37 : vector<9x32xf32> to vector<9x32xbf16>
    %c0_14 = arith.constant 0 : index
    %c0_15 = arith.constant 0 : index
    %c0_16 = arith.constant 0 : index
    %39 = vector.load %arg3[%c0_14, %c0_15, %c0_16] : memref<1x9x1xf32, #tpu.memory_space<vmem>>, vector<1x9x1xf32>
    %c0_17 = arith.constant 0 : index
    %c0_18 = arith.constant 0 : index
    %c0_19 = arith.constant 0 : index
    %40 = vector.load %arg2[%c0_17, %c0_18, %c0_19] : memref<1x1x9xf32, #tpu.memory_space<vmem>>, vector<1x1x9xf32>
    %41 = vector.broadcast %39 : vector<1x9x1xf32> to vector<1x9x9xf32>
    %42 = vector.broadcast %40 : vector<1x1x9xf32> to vector<1x9x9xf32>
    %43 = arith.mulf %41, %42 : vector<1x9x9xf32>
    %cst_20 = arith.constant 5.000000e-01 : f32
    %44 = vector.broadcast %cst_20 : f32 to vector<1x9x9xf32>
    %45 = arith.cmpf ogt, %43, %44 : vector<1x9x9xf32>
    %46 = tpu.iota {dimensions = array<i32: 0>} : vector<9x9xi32>
    %47 = tpu.iota {dimensions = array<i32: 1>} : vector<9x9xi32>
    %48 = arith.cmpi sle, %47, %46 : vector<9x9xi32>
    %49 = vector.shape_cast %48 : vector<9x9xi1> to vector<1x9x9xi1>
    %50 = arith.andi %45, %49 : vector<1x9x9xi1>
    %cst_21 = arith.constant 0.000000e+00 : f32
    %51 = vector.broadcast %cst_21 : f32 to vector<9x32xf32>
    %52 = vector.extract_strided_slice %34 {offsets = [0, 0], sizes = [9, 4], strides = [1, 1]} : vector<9x32xbf16> to vector<9x4xbf16>
    %53 = vector.shape_cast %52 : vector<9x4xbf16> to vector<1x9x4xbf16>
    %54 = vector.extract_strided_slice %36 {offsets = [0, 0], sizes = [9, 4], strides = [1, 1]} : vector<9x32xbf16> to vector<9x4xbf16>
    %55 = vector.shape_cast %54 : vector<9x4xbf16> to vector<1x9x4xbf16>
    %56 = vector.extract_strided_slice %38 {offsets = [0, 0], sizes = [9, 4], strides = [1, 1]} : vector<9x32xbf16> to vector<9x4xbf16>
    %57 = vector.shape_cast %56 : vector<9x4xbf16> to vector<1x9x4xbf16>
    "tpu.trace_start"() <{level = 10 : i32, message = "bie,bje->bij"}> : () -> ()
    %cst_22 = arith.constant dense<0.000000e+00> : vector<1x9x9xf32>
    %58 = tpu.matmul %53, %55, %cst_22 {dimension_numbers = #tpu.dot_dimension_numbers<[2], [2], [1], [1], [0, 0, 0, 1, 1, 1], [0], [0]>} : vector<1x9x4xbf16>, vector<1x9x4xbf16>, vector<1x9x9xf32> -> vector<1x9x9xf32>
    %cst_23 = arith.constant -3.40282347E+38 : f32
    "tpu.trace_stop"() : () -> ()
    %59 = vector.broadcast %cst_23 : f32 to vector<1x9x9xf32>
    %60 = arith.select %50, %58, %59 : vector<1x9x9xi1>, vector<1x9x9xf32>
    %cst_24 = arith.constant dense<0xFF800000> : vector<1x9xf32>
    %61 = vector.multi_reduction <maximumf>, %60, %cst_24 [2] : vector<1x9x9xf32> to vector<1x9xf32>
    %62 = vector.shape_cast %61 : vector<1x9xf32> to vector<1x9x1xf32>
    %63 = vector.broadcast %62 : vector<1x9x1xf32> to vector<1x9x9xf32>
    %64 = arith.subf %60, %63 : vector<1x9x9xf32>
    %65 = math.exp %64 : vector<1x9x9xf32>
    %cst_25 = arith.constant dense<0.000000e+00> : vector<1x9xf32>
    %66 = vector.multi_reduction <add>, %65, %cst_25 [2] : vector<1x9x9xf32> to vector<1x9xf32>
    %67 = vector.shape_cast %66 : vector<1x9xf32> to vector<1x9x1xf32>
    %68 = tpu.reciprocal %67 {approx = true} : vector<1x9x1xf32> -> vector<1x9x1xf32>
    %69 = vector.broadcast %68 : vector<1x9x1xf32> to vector<1x9x9xf32>
    %70 = arith.mulf %65, %69 : vector<1x9x9xf32>
    %71 = arith.truncf %70 : vector<1x9x9xf32> to vector<1x9x9xbf16>
    "tpu.trace_start"() <{level = 10 : i32, message = "bij,bje->bie"}> : () -> ()
    %cst_26 = arith.constant dense<0.000000e+00> : vector<1x9x4xf32>
    %72 = tpu.matmul %71, %57, %cst_26 {dimension_numbers = #tpu.dot_dimension_numbers<[2], [1], [1], [2], [0, 0, 0, 1, 1, 2], [0], [0]>} : vector<1x9x9xbf16>, vector<1x9x4xbf16>, vector<1x9x4xf32> -> vector<1x9x4xf32>
    "tpu.trace_stop"() : () -> ()
    %73 = vector.shape_cast %72 : vector<1x9x4xf32> to vector<9x4xf32>
    %74 = arith.truncf %73 : vector<9x4xf32> to vector<9x4xbf16>
    %c0_27 = arith.constant 0 : index
    %c0_28 = arith.constant 0 : index
    %c0_29 = arith.constant 0 : index
    %75 = vector.load %arg7[%c0_27, %c0_28, %c0_29] : memref<8x4x32xbf16, #tpu.memory_space<vmem>>, vector<1x4x32xbf16>
    %76 = vector.shape_cast %75 : vector<1x4x32xbf16> to vector<4x32xbf16>
    %cst_30 = arith.constant dense<0.000000e+00> : vector<9x32xf32>
    %77 = tpu.matmul %74, %76, %cst_30 {dimension_numbers = #tpu.dot_dimension_numbers<[1], [0], [0], [1], [0, 0, 1, 1], [], []>} : vector<9x4xbf16>, vector<4x32xbf16>, vector<9x32xf32> -> vector<9x32xf32>
    %78 = arith.addf %51, %77 : vector<9x32xf32>
    %79 = vector.extract_strided_slice %34 {offsets = [0, 4], sizes = [9, 4], strides = [1, 1]} : vector<9x32xbf16> to vector<9x4xbf16>
    %80 = vector.shape_cast %79 : vector<9x4xbf16> to vector<1x9x4xbf16>
    %81 = vector.extract_strided_slice %36 {offsets = [0, 4], sizes = [9, 4], strides = [1, 1]} : vector<9x32xbf16> to vector<9x4xbf16>
    %82 = vector.shape_cast %81 : vector<9x4xbf16> to vector<1x9x4xbf16>
    %83 = vector.extract_strided_slice %38 {offsets = [0, 4], sizes = [9, 4], strides = [1, 1]} : vector<9x32xbf16> to vector<9x4xbf16>
    %84 = vector.shape_cast %83 : vector<9x4xbf16> to vector<1x9x4xbf16>
    "tpu.trace_start"() <{level = 10 : i32, message = "bie,bje->bij"}> : () -> ()
    %cst_31 = arith.constant dense<0.000000e+00> : vector<1x9x9xf32>
    %85 = tpu.matmul %80, %82, %cst_31 {dimension_numbers = #tpu.dot_dimension_numbers<[2], [2], [1], [1], [0, 0, 0, 1, 1, 1], [0], [0]>} : vector<1x9x4xbf16>, vector<1x9x4xbf16>, vector<1x9x9xf32> -> vector<1x9x9xf32>
    %cst_32 = arith.constant -3.40282347E+38 : f32
    "tpu.trace_stop"() : () -> ()
    %86 = vector.broadcast %cst_32 : f32 to vector<1x9x9xf32>
    %87 = arith.select %50, %85, %86 : vector<1x9x9xi1>, vector<1x9x9xf32>
    %cst_33 = arith.constant dense<0xFF800000> : vector<1x9xf32>
    %88 = vector.multi_reduction <maximumf>, %87, %cst_33 [2] : vector<1x9x9xf32> to vector<1x9xf32>
    %89 = vector.shape_cast %88 : vector<1x9xf32> to vector<1x9x1xf32>
    %90 = vector.broadcast %89 : vector<1x9x1xf32> to vector<1x9x9xf32>
    %91 = arith.subf %87, %90 : vector<1x9x9xf32>
    %92 = math.exp %91 : vector<1x9x9xf32>
    %cst_34 = arith.constant dense<0.000000e+00> : vector<1x9xf32>
    %93 = vector.multi_reduction <add>, %92, %cst_34 [2] : vector<1x9x9xf32> to vector<1x9xf32>
    %94 = vector.shape_cast %93 : vector<1x9xf32> to vector<1x9x1xf32>
    %95 = tpu.reciprocal %94 {approx = true} : vector<1x9x1xf32> -> vector<1x9x1xf32>
    %96 = vector.broadcast %95 : vector<1x9x1xf32> to vector<1x9x9xf32>
    %97 = arith.mulf %92, %96 : vector<1x9x9xf32>
    %98 = arith.truncf %97 : vector<1x9x9xf32> to vector<1x9x9xbf16>
    "tpu.trace_start"() <{level = 10 : i32, message = "bij,bje->bie"}> : () -> ()
    %cst_35 = arith.constant dense<0.000000e+00> : vector<1x9x4xf32>
    %99 = tpu.matmul %98, %84, %cst_35 {dimension_numbers = #tpu.dot_dimension_numbers<[2], [1], [1], [2], [0, 0, 0, 1, 1, 2], [0], [0]>} : vector<1x9x9xbf16>, vector<1x9x4xbf16>, vector<1x9x4xf32> -> vector<1x9x4xf32>
    "tpu.trace_stop"() : () -> ()
    %100 = vector.shape_cast %99 : vector<1x9x4xf32> to vector<9x4xf32>
    %101 = arith.truncf %100 : vector<9x4xf32> to vector<9x4xbf16>
    %c1 = arith.constant 1 : index
    %c0_36 = arith.constant 0 : index
    %c0_37 = arith.constant 0 : index
    %102 = vector.load %arg7[%c1, %c0_36, %c0_37] : memref<8x4x32xbf16, #tpu.memory_space<vmem>>, vector<1x4x32xbf16>
    %103 = vector.shape_cast %102 : vector<1x4x32xbf16> to vector<4x32xbf16>
    %cst_38 = arith.constant dense<0.000000e+00> : vector<9x32xf32>
    %104 = tpu.matmul %101, %103, %cst_38 {dimension_numbers = #tpu.dot_dimension_numbers<[1], [0], [0], [1], [0, 0, 1, 1], [], []>} : vector<9x4xbf16>, vector<4x32xbf16>, vector<9x32xf32> -> vector<9x32xf32>
    %105 = arith.addf %78, %104 : vector<9x32xf32>
    %106 = vector.extract_strided_slice %34 {offsets = [0, 8], sizes = [9, 4], strides = [1, 1]} : vector<9x32xbf16> to vector<9x4xbf16>
    %107 = vector.shape_cast %106 : vector<9x4xbf16> to vector<1x9x4xbf16>
    %108 = vector.extract_strided_slice %36 {offsets = [0, 8], sizes = [9, 4], strides = [1, 1]} : vector<9x32xbf16> to vector<9x4xbf16>
    %109 = vector.shape_cast %108 : vector<9x4xbf16> to vector<1x9x4xbf16>
    %110 = vector.extract_strided_slice %38 {offsets = [0, 8], sizes = [9, 4], strides = [1, 1]} : vector<9x32xbf16> to vector<9x4xbf16>
    %111 = vector.shape_cast %110 : vector<9x4xbf16> to vector<1x9x4xbf16>
    "tpu.trace_start"() <{level = 10 : i32, message = "bie,bje->bij"}> : () -> ()
    %cst_39 = arith.constant dense<0.000000e+00> : vector<1x9x9xf32>
    %112 = tpu.matmul %107, %109, %cst_39 {dimension_numbers = #tpu.dot_dimension_numbers<[2], [2], [1], [1], [0, 0, 0, 1, 1, 1], [0], [0]>} : vector<1x9x4xbf16>, vector<1x9x4xbf16>, vector<1x9x9xf32> -> vector<1x9x9xf32>
    %cst_40 = arith.constant -3.40282347E+38 : f32
    "tpu.trace_stop"() : () -> ()
    %113 = vector.broadcast %cst_40 : f32 to vector<1x9x9xf32>
    %114 = arith.select %50, %112, %113 : vector<1x9x9xi1>, vector<1x9x9xf32>
    %cst_41 = arith.constant dense<0xFF800000> : vector<1x9xf32>
    %115 = vector.multi_reduction <maximumf>, %114, %cst_41 [2] : vector<1x9x9xf32> to vector<1x9xf32>
    %116 = vector.shape_cast %115 : vector<1x9xf32> to vector<1x9x1xf32>
    %117 = vector.broadcast %116 : vector<1x9x1xf32> to vector<1x9x9xf32>
    %118 = arith.subf %114, %117 : vector<1x9x9xf32>
    %119 = math.exp %118 : vector<1x9x9xf32>
    %cst_42 = arith.constant dense<0.000000e+00> : vector<1x9xf32>
    %120 = vector.multi_reduction <add>, %119, %cst_42 [2] : vector<1x9x9xf32> to vector<1x9xf32>
    %121 = vector.shape_cast %120 : vector<1x9xf32> to vector<1x9x1xf32>
    %122 = tpu.reciprocal %121 {approx = true} : vector<1x9x1xf32> -> vector<1x9x1xf32>
    %123 = vector.broadcast %122 : vector<1x9x1xf32> to vector<1x9x9xf32>
    %124 = arith.mulf %119, %123 : vector<1x9x9xf32>
    %125 = arith.truncf %124 : vector<1x9x9xf32> to vector<1x9x9xbf16>
    "tpu.trace_start"() <{level = 10 : i32, message = "bij,bje->bie"}> : () -> ()
    %cst_43 = arith.constant dense<0.000000e+00> : vector<1x9x4xf32>
    %126 = tpu.matmul %125, %111, %cst_43 {dimension_numbers = #tpu.dot_dimension_numbers<[2], [1], [1], [2], [0, 0, 0, 1, 1, 2], [0], [0]>} : vector<1x9x9xbf16>, vector<1x9x4xbf16>, vector<1x9x4xf32> -> vector<1x9x4xf32>
    "tpu.trace_stop"() : () -> ()
    %127 = vector.shape_cast %126 : vector<1x9x4xf32> to vector<9x4xf32>
    %128 = arith.truncf %127 : vector<9x4xf32> to vector<9x4xbf16>
    %c2 = arith.constant 2 : index
    %c0_44 = arith.constant 0 : index
    %c0_45 = arith.constant 0 : index
    %129 = vector.load %arg7[%c2, %c0_44, %c0_45] : memref<8x4x32xbf16, #tpu.memory_space<vmem>>, vector<1x4x32xbf16>
    %130 = vector.shape_cast %129 : vector<1x4x32xbf16> to vector<4x32xbf16>
    %cst_46 = arith.constant dense<0.000000e+00> : vector<9x32xf32>
    %131 = tpu.matmul %128, %130, %cst_46 {dimension_numbers = #tpu.dot_dimension_numbers<[1], [0], [0], [1], [0, 0, 1, 1], [], []>} : vector<9x4xbf16>, vector<4x32xbf16>, vector<9x32xf32> -> vector<9x32xf32>
    %132 = arith.addf %105, %131 : vector<9x32xf32>
    %133 = vector.extract_strided_slice %34 {offsets = [0, 12], sizes = [9, 4], strides = [1, 1]} : vector<9x32xbf16> to vector<9x4xbf16>
    %134 = vector.shape_cast %133 : vector<9x4xbf16> to vector<1x9x4xbf16>
    %135 = vector.extract_strided_slice %36 {offsets = [0, 12], sizes = [9, 4], strides = [1, 1]} : vector<9x32xbf16> to vector<9x4xbf16>
    %136 = vector.shape_cast %135 : vector<9x4xbf16> to vector<1x9x4xbf16>
    %137 = vector.extract_strided_slice %38 {offsets = [0, 12], sizes = [9, 4], strides = [1, 1]} : vector<9x32xbf16> to vector<9x4xbf16>
    %138 = vector.shape_cast %137 : vector<9x4xbf16> to vector<1x9x4xbf16>
    "tpu.trace_start"() <{level = 10 : i32, message = "bie,bje->bij"}> : () -> ()
    %cst_47 = arith.constant dense<0.000000e+00> : vector<1x9x9xf32>
    %139 = tpu.matmul %134, %136, %cst_47 {dimension_numbers = #tpu.dot_dimension_numbers<[2], [2], [1], [1], [0, 0, 0, 1, 1, 1], [0], [0]>} : vector<1x9x4xbf16>, vector<1x9x4xbf16>, vector<1x9x9xf32> -> vector<1x9x9xf32>
    %cst_48 = arith.constant -3.40282347E+38 : f32
    "tpu.trace_stop"() : () -> ()
    %140 = vector.broadcast %cst_48 : f32 to vector<1x9x9xf32>
    %141 = arith.select %50, %139, %140 : vector<1x9x9xi1>, vector<1x9x9xf32>
    %cst_49 = arith.constant dense<0xFF800000> : vector<1x9xf32>
    %142 = vector.multi_reduction <maximumf>, %141, %cst_49 [2] : vector<1x9x9xf32> to vector<1x9xf32>
    %143 = vector.shape_cast %142 : vector<1x9xf32> to vector<1x9x1xf32>
    %144 = vector.broadcast %143 : vector<1x9x1xf32> to vector<1x9x9xf32>
    %145 = arith.subf %141, %144 : vector<1x9x9xf32>
    %146 = math.exp %145 : vector<1x9x9xf32>
    %cst_50 = arith.constant dense<0.000000e+00> : vector<1x9xf32>
    %147 = vector.multi_reduction <add>, %146, %cst_50 [2] : vector<1x9x9xf32> to vector<1x9xf32>
    %148 = vector.shape_cast %147 : vector<1x9xf32> to vector<1x9x1xf32>
    %149 = tpu.reciprocal %148 {approx = true} : vector<1x9x1xf32> -> vector<1x9x1xf32>
    %150 = vector.broadcast %149 : vector<1x9x1xf32> to vector<1x9x9xf32>
    %151 = arith.mulf %146, %150 : vector<1x9x9xf32>
    %152 = arith.truncf %151 : vector<1x9x9xf32> to vector<1x9x9xbf16>
    "tpu.trace_start"() <{level = 10 : i32, message = "bij,bje->bie"}> : () -> ()
    %cst_51 = arith.constant dense<0.000000e+00> : vector<1x9x4xf32>
    %153 = tpu.matmul %152, %138, %cst_51 {dimension_numbers = #tpu.dot_dimension_numbers<[2], [1], [1], [2], [0, 0, 0, 1, 1, 2], [0], [0]>} : vector<1x9x9xbf16>, vector<1x9x4xbf16>, vector<1x9x4xf32> -> vector<1x9x4xf32>
    "tpu.trace_stop"() : () -> ()
    %154 = vector.shape_cast %153 : vector<1x9x4xf32> to vector<9x4xf32>
    %155 = arith.truncf %154 : vector<9x4xf32> to vector<9x4xbf16>
    %c3 = arith.constant 3 : index
    %c0_52 = arith.constant 0 : index
    %c0_53 = arith.constant 0 : index
    %156 = vector.load %arg7[%c3, %c0_52, %c0_53] : memref<8x4x32xbf16, #tpu.memory_space<vmem>>, vector<1x4x32xbf16>
    %157 = vector.shape_cast %156 : vector<1x4x32xbf16> to vector<4x32xbf16>
    %cst_54 = arith.constant dense<0.000000e+00> : vector<9x32xf32>
    %158 = tpu.matmul %155, %157, %cst_54 {dimension_numbers = #tpu.dot_dimension_numbers<[1], [0], [0], [1], [0, 0, 1, 1], [], []>} : vector<9x4xbf16>, vector<4x32xbf16>, vector<9x32xf32> -> vector<9x32xf32>
    %159 = arith.addf %132, %158 : vector<9x32xf32>
    %160 = vector.extract_strided_slice %34 {offsets = [0, 16], sizes = [9, 4], strides = [1, 1]} : vector<9x32xbf16> to vector<9x4xbf16>
    %161 = vector.shape_cast %160 : vector<9x4xbf16> to vector<1x9x4xbf16>
    %162 = vector.extract_strided_slice %36 {offsets = [0, 16], sizes = [9, 4], strides = [1, 1]} : vector<9x32xbf16> to vector<9x4xbf16>
    %163 = vector.shape_cast %162 : vector<9x4xbf16> to vector<1x9x4xbf16>
    %164 = vector.extract_strided_slice %38 {offsets = [0, 16], sizes = [9, 4], strides = [1, 1]} : vector<9x32xbf16> to vector<9x4xbf16>
    %165 = vector.shape_cast %164 : vector<9x4xbf16> to vector<1x9x4xbf16>
    "tpu.trace_start"() <{level = 10 : i32, message = "bie,bje->bij"}> : () -> ()
    %cst_55 = arith.constant dense<0.000000e+00> : vector<1x9x9xf32>
    %166 = tpu.matmul %161, %163, %cst_55 {dimension_numbers = #tpu.dot_dimension_numbers<[2], [2], [1], [1], [0, 0, 0, 1, 1, 1], [0], [0]>} : vector<1x9x4xbf16>, vector<1x9x4xbf16>, vector<1x9x9xf32> -> vector<1x9x9xf32>
    %cst_56 = arith.constant -3.40282347E+38 : f32
    "tpu.trace_stop"() : () -> ()
    %167 = vector.broadcast %cst_56 : f32 to vector<1x9x9xf32>
    %168 = arith.select %50, %166, %167 : vector<1x9x9xi1>, vector<1x9x9xf32>
    %cst_57 = arith.constant dense<0xFF800000> : vector<1x9xf32>
    %169 = vector.multi_reduction <maximumf>, %168, %cst_57 [2] : vector<1x9x9xf32> to vector<1x9xf32>
    %170 = vector.shape_cast %169 : vector<1x9xf32> to vector<1x9x1xf32>
    %171 = vector.broadcast %170 : vector<1x9x1xf32> to vector<1x9x9xf32>
    %172 = arith.subf %168, %171 : vector<1x9x9xf32>
    %173 = math.exp %172 : vector<1x9x9xf32>
    %cst_58 = arith.constant dense<0.000000e+00> : vector<1x9xf32>
    %174 = vector.multi_reduction <add>, %173, %cst_58 [2] : vector<1x9x9xf32> to vector<1x9xf32>
    %175 = vector.shape_cast %174 : vector<1x9xf32> to vector<1x9x1xf32>
    %176 = tpu.reciprocal %175 {approx = true} : vector<1x9x1xf32> -> vector<1x9x1xf32>
    %177 = vector.broadcast %176 : vector<1x9x1xf32> to vector<1x9x9xf32>
    %178 = arith.mulf %173, %177 : vector<1x9x9xf32>
    %179 = arith.truncf %178 : vector<1x9x9xf32> to vector<1x9x9xbf16>
    "tpu.trace_start"() <{level = 10 : i32, message = "bij,bje->bie"}> : () -> ()
    %cst_59 = arith.constant dense<0.000000e+00> : vector<1x9x4xf32>
    %180 = tpu.matmul %179, %165, %cst_59 {dimension_numbers = #tpu.dot_dimension_numbers<[2], [1], [1], [2], [0, 0, 0, 1, 1, 2], [0], [0]>} : vector<1x9x9xbf16>, vector<1x9x4xbf16>, vector<1x9x4xf32> -> vector<1x9x4xf32>
    "tpu.trace_stop"() : () -> ()
    %181 = vector.shape_cast %180 : vector<1x9x4xf32> to vector<9x4xf32>
    %182 = arith.truncf %181 : vector<9x4xf32> to vector<9x4xbf16>
    %c4 = arith.constant 4 : index
    %c0_60 = arith.constant 0 : index
    %c0_61 = arith.constant 0 : index
    %183 = vector.load %arg7[%c4, %c0_60, %c0_61] : memref<8x4x32xbf16, #tpu.memory_space<vmem>>, vector<1x4x32xbf16>
    %184 = vector.shape_cast %183 : vector<1x4x32xbf16> to vector<4x32xbf16>
    %cst_62 = arith.constant dense<0.000000e+00> : vector<9x32xf32>
    %185 = tpu.matmul %182, %184, %cst_62 {dimension_numbers = #tpu.dot_dimension_numbers<[1], [0], [0], [1], [0, 0, 1, 1], [], []>} : vector<9x4xbf16>, vector<4x32xbf16>, vector<9x32xf32> -> vector<9x32xf32>
    %186 = arith.addf %159, %185 : vector<9x32xf32>
    %187 = vector.extract_strided_slice %34 {offsets = [0, 20], sizes = [9, 4], strides = [1, 1]} : vector<9x32xbf16> to vector<9x4xbf16>
    %188 = vector.shape_cast %187 : vector<9x4xbf16> to vector<1x9x4xbf16>
    %189 = vector.extract_strided_slice %36 {offsets = [0, 20], sizes = [9, 4], strides = [1, 1]} : vector<9x32xbf16> to vector<9x4xbf16>
    %190 = vector.shape_cast %189 : vector<9x4xbf16> to vector<1x9x4xbf16>
    %191 = vector.extract_strided_slice %38 {offsets = [0, 20], sizes = [9, 4], strides = [1, 1]} : vector<9x32xbf16> to vector<9x4xbf16>
    %192 = vector.shape_cast %191 : vector<9x4xbf16> to vector<1x9x4xbf16>
    "tpu.trace_start"() <{level = 10 : i32, message = "bie,bje->bij"}> : () -> ()
    %cst_63 = arith.constant dense<0.000000e+00> : vector<1x9x9xf32>
    %193 = tpu.matmul %188, %190, %cst_63 {dimension_numbers = #tpu.dot_dimension_numbers<[2], [2], [1], [1], [0, 0, 0, 1, 1, 1], [0], [0]>} : vector<1x9x4xbf16>, vector<1x9x4xbf16>, vector<1x9x9xf32> -> vector<1x9x9xf32>
    %cst_64 = arith.constant -3.40282347E+38 : f32
    "tpu.trace_stop"() : () -> ()
    %194 = vector.broadcast %cst_64 : f32 to vector<1x9x9xf32>
    %195 = arith.select %50, %193, %194 : vector<1x9x9xi1>, vector<1x9x9xf32>
    %cst_65 = arith.constant dense<0xFF800000> : vector<1x9xf32>
    %196 = vector.multi_reduction <maximumf>, %195, %cst_65 [2] : vector<1x9x9xf32> to vector<1x9xf32>
    %197 = vector.shape_cast %196 : vector<1x9xf32> to vector<1x9x1xf32>
    %198 = vector.broadcast %197 : vector<1x9x1xf32> to vector<1x9x9xf32>
    %199 = arith.subf %195, %198 : vector<1x9x9xf32>
    %200 = math.exp %199 : vector<1x9x9xf32>
    %cst_66 = arith.constant dense<0.000000e+00> : vector<1x9xf32>
    %201 = vector.multi_reduction <add>, %200, %cst_66 [2] : vector<1x9x9xf32> to vector<1x9xf32>
    %202 = vector.shape_cast %201 : vector<1x9xf32> to vector<1x9x1xf32>
    %203 = tpu.reciprocal %202 {approx = true} : vector<1x9x1xf32> -> vector<1x9x1xf32>
    %204 = vector.broadcast %203 : vector<1x9x1xf32> to vector<1x9x9xf32>
    %205 = arith.mulf %200, %204 : vector<1x9x9xf32>
    %206 = arith.truncf %205 : vector<1x9x9xf32> to vector<1x9x9xbf16>
    "tpu.trace_start"() <{level = 10 : i32, message = "bij,bje->bie"}> : () -> ()
    %cst_67 = arith.constant dense<0.000000e+00> : vector<1x9x4xf32>
    %207 = tpu.matmul %206, %192, %cst_67 {dimension_numbers = #tpu.dot_dimension_numbers<[2], [1], [1], [2], [0, 0, 0, 1, 1, 2], [0], [0]>} : vector<1x9x9xbf16>, vector<1x9x4xbf16>, vector<1x9x4xf32> -> vector<1x9x4xf32>
    "tpu.trace_stop"() : () -> ()
    %208 = vector.shape_cast %207 : vector<1x9x4xf32> to vector<9x4xf32>
    %209 = arith.truncf %208 : vector<9x4xf32> to vector<9x4xbf16>
    %c5 = arith.constant 5 : index
    %c0_68 = arith.constant 0 : index
    %c0_69 = arith.constant 0 : index
    %210 = vector.load %arg7[%c5, %c0_68, %c0_69] : memref<8x4x32xbf16, #tpu.memory_space<vmem>>, vector<1x4x32xbf16>
    %211 = vector.shape_cast %210 : vector<1x4x32xbf16> to vector<4x32xbf16>
    %cst_70 = arith.constant dense<0.000000e+00> : vector<9x32xf32>
    %212 = tpu.matmul %209, %211, %cst_70 {dimension_numbers = #tpu.dot_dimension_numbers<[1], [0], [0], [1], [0, 0, 1, 1], [], []>} : vector<9x4xbf16>, vector<4x32xbf16>, vector<9x32xf32> -> vector<9x32xf32>
    %213 = arith.addf %186, %212 : vector<9x32xf32>
    %214 = vector.extract_strided_slice %34 {offsets = [0, 24], sizes = [9, 4], strides = [1, 1]} : vector<9x32xbf16> to vector<9x4xbf16>
    %215 = vector.shape_cast %214 : vector<9x4xbf16> to vector<1x9x4xbf16>
    %216 = vector.extract_strided_slice %36 {offsets = [0, 24], sizes = [9, 4], strides = [1, 1]} : vector<9x32xbf16> to vector<9x4xbf16>
    %217 = vector.shape_cast %216 : vector<9x4xbf16> to vector<1x9x4xbf16>
    %218 = vector.extract_strided_slice %38 {offsets = [0, 24], sizes = [9, 4], strides = [1, 1]} : vector<9x32xbf16> to vector<9x4xbf16>
    %219 = vector.shape_cast %218 : vector<9x4xbf16> to vector<1x9x4xbf16>
    "tpu.trace_start"() <{level = 10 : i32, message = "bie,bje->bij"}> : () -> ()
    %cst_71 = arith.constant dense<0.000000e+00> : vector<1x9x9xf32>
    %220 = tpu.matmul %215, %217, %cst_71 {dimension_numbers = #tpu.dot_dimension_numbers<[2], [2], [1], [1], [0, 0, 0, 1, 1, 1], [0], [0]>} : vector<1x9x4xbf16>, vector<1x9x4xbf16>, vector<1x9x9xf32> -> vector<1x9x9xf32>
    %cst_72 = arith.constant -3.40282347E+38 : f32
    "tpu.trace_stop"() : () -> ()
    %221 = vector.broadcast %cst_72 : f32 to vector<1x9x9xf32>
    %222 = arith.select %50, %220, %221 : vector<1x9x9xi1>, vector<1x9x9xf32>
    %cst_73 = arith.constant dense<0xFF800000> : vector<1x9xf32>
    %223 = vector.multi_reduction <maximumf>, %222, %cst_73 [2] : vector<1x9x9xf32> to vector<1x9xf32>
    %224 = vector.shape_cast %223 : vector<1x9xf32> to vector<1x9x1xf32>
    %225 = vector.broadcast %224 : vector<1x9x1xf32> to vector<1x9x9xf32>
    %226 = arith.subf %222, %225 : vector<1x9x9xf32>
    %227 = math.exp %226 : vector<1x9x9xf32>
    %cst_74 = arith.constant dense<0.000000e+00> : vector<1x9xf32>
    %228 = vector.multi_reduction <add>, %227, %cst_74 [2] : vector<1x9x9xf32> to vector<1x9xf32>
    %229 = vector.shape_cast %228 : vector<1x9xf32> to vector<1x9x1xf32>
    %230 = tpu.reciprocal %229 {approx = true} : vector<1x9x1xf32> -> vector<1x9x1xf32>
    %231 = vector.broadcast %230 : vector<1x9x1xf32> to vector<1x9x9xf32>
    %232 = arith.mulf %227, %231 : vector<1x9x9xf32>
    %233 = arith.truncf %232 : vector<1x9x9xf32> to vector<1x9x9xbf16>
    "tpu.trace_start"() <{level = 10 : i32, message = "bij,bje->bie"}> : () -> ()
    %cst_75 = arith.constant dense<0.000000e+00> : vector<1x9x4xf32>
    %234 = tpu.matmul %233, %219, %cst_75 {dimension_numbers = #tpu.dot_dimension_numbers<[2], [1], [1], [2], [0, 0, 0, 1, 1, 2], [0], [0]>} : vector<1x9x9xbf16>, vector<1x9x4xbf16>, vector<1x9x4xf32> -> vector<1x9x4xf32>
    "tpu.trace_stop"() : () -> ()
    %235 = vector.shape_cast %234 : vector<1x9x4xf32> to vector<9x4xf32>
    %236 = arith.truncf %235 : vector<9x4xf32> to vector<9x4xbf16>
    %c6 = arith.constant 6 : index
    %c0_76 = arith.constant 0 : index
    %c0_77 = arith.constant 0 : index
    %237 = vector.load %arg7[%c6, %c0_76, %c0_77] : memref<8x4x32xbf16, #tpu.memory_space<vmem>>, vector<1x4x32xbf16>
    %238 = vector.shape_cast %237 : vector<1x4x32xbf16> to vector<4x32xbf16>
    %cst_78 = arith.constant dense<0.000000e+00> : vector<9x32xf32>
    %239 = tpu.matmul %236, %238, %cst_78 {dimension_numbers = #tpu.dot_dimension_numbers<[1], [0], [0], [1], [0, 0, 1, 1], [], []>} : vector<9x4xbf16>, vector<4x32xbf16>, vector<9x32xf32> -> vector<9x32xf32>
    %240 = arith.addf %213, %239 : vector<9x32xf32>
    %241 = vector.extract_strided_slice %34 {offsets = [0, 28], sizes = [9, 4], strides = [1, 1]} : vector<9x32xbf16> to vector<9x4xbf16>
    %242 = vector.shape_cast %241 : vector<9x4xbf16> to vector<1x9x4xbf16>
    %243 = vector.extract_strided_slice %36 {offsets = [0, 28], sizes = [9, 4], strides = [1, 1]} : vector<9x32xbf16> to vector<9x4xbf16>
    %244 = vector.shape_cast %243 : vector<9x4xbf16> to vector<1x9x4xbf16>
    %245 = vector.extract_strided_slice %38 {offsets = [0, 28], sizes = [9, 4], strides = [1, 1]} : vector<9x32xbf16> to vector<9x4xbf16>
    %246 = vector.shape_cast %245 : vector<9x4xbf16> to vector<1x9x4xbf16>
    "tpu.trace_start"() <{level = 10 : i32, message = "bie,bje->bij"}> : () -> ()
    %cst_79 = arith.constant dense<0.000000e+00> : vector<1x9x9xf32>
    %247 = tpu.matmul %242, %244, %cst_79 {dimension_numbers = #tpu.dot_dimension_numbers<[2], [2], [1], [1], [0, 0, 0, 1, 1, 1], [0], [0]>} : vector<1x9x4xbf16>, vector<1x9x4xbf16>, vector<1x9x9xf32> -> vector<1x9x9xf32>
    %cst_80 = arith.constant -3.40282347E+38 : f32
    "tpu.trace_stop"() : () -> ()
    %248 = vector.broadcast %cst_80 : f32 to vector<1x9x9xf32>
    %249 = arith.select %50, %247, %248 : vector<1x9x9xi1>, vector<1x9x9xf32>
    %cst_81 = arith.constant dense<0xFF800000> : vector<1x9xf32>
    %250 = vector.multi_reduction <maximumf>, %249, %cst_81 [2] : vector<1x9x9xf32> to vector<1x9xf32>
    %251 = vector.shape_cast %250 : vector<1x9xf32> to vector<1x9x1xf32>
    %252 = vector.broadcast %251 : vector<1x9x1xf32> to vector<1x9x9xf32>
    %253 = arith.subf %249, %252 : vector<1x9x9xf32>
    %254 = math.exp %253 : vector<1x9x9xf32>
    %cst_82 = arith.constant dense<0.000000e+00> : vector<1x9xf32>
    %255 = vector.multi_reduction <add>, %254, %cst_82 [2] : vector<1x9x9xf32> to vector<1x9xf32>
    %256 = vector.shape_cast %255 : vector<1x9xf32> to vector<1x9x1xf32>
    %257 = tpu.reciprocal %256 {approx = true} : vector<1x9x1xf32> -> vector<1x9x1xf32>
    %258 = vector.broadcast %257 : vector<1x9x1xf32> to vector<1x9x9xf32>
    %259 = arith.mulf %254, %258 : vector<1x9x9xf32>
    %260 = arith.truncf %259 : vector<1x9x9xf32> to vector<1x9x9xbf16>
    "tpu.trace_start"() <{level = 10 : i32, message = "bij,bje->bie"}> : () -> ()
    %cst_83 = arith.constant dense<0.000000e+00> : vector<1x9x4xf32>
    %261 = tpu.matmul %260, %246, %cst_83 {dimension_numbers = #tpu.dot_dimension_numbers<[2], [1], [1], [2], [0, 0, 0, 1, 1, 2], [0], [0]>} : vector<1x9x9xbf16>, vector<1x9x4xbf16>, vector<1x9x4xf32> -> vector<1x9x4xf32>
    "tpu.trace_stop"() : () -> ()
    %262 = vector.shape_cast %261 : vector<1x9x4xf32> to vector<9x4xf32>
    %263 = arith.truncf %262 : vector<9x4xf32> to vector<9x4xbf16>
    %c7 = arith.constant 7 : index
    %c0_84 = arith.constant 0 : index
    %c0_85 = arith.constant 0 : index
    %264 = vector.load %arg7[%c7, %c0_84, %c0_85] : memref<8x4x32xbf16, #tpu.memory_space<vmem>>, vector<1x4x32xbf16>
    %265 = vector.shape_cast %264 : vector<1x4x32xbf16> to vector<4x32xbf16>
    %cst_86 = arith.constant dense<0.000000e+00> : vector<9x32xf32>
    %266 = tpu.matmul %263, %265, %cst_86 {dimension_numbers = #tpu.dot_dimension_numbers<[1], [0], [0], [1], [0, 0, 1, 1], [], []>} : vector<9x4xbf16>, vector<4x32xbf16>, vector<9x32xf32> -> vector<9x32xf32>
    %267 = arith.addf %240, %266 : vector<9x32xf32>
    %268 = vector.shape_cast %267 : vector<9x32xf32> to vector<1x9x32xf32>
    %269 = arith.addf %0, %268 : vector<1x9x32xf32>
    %c0_87 = arith.constant 0 : index
    %c0_88 = arith.constant 0 : index
    %270 = vector.load %arg8[%c0_87, %c0_88] : memref<1x32xf32, #tpu.memory_space<vmem>>, vector<1x32xf32>
    %271 = vector.shape_cast %270 : vector<1x32xf32> to vector<1x1x32xf32>
    %272 = vector.broadcast %271 : vector<1x1x32xf32> to vector<1x9x32xf32>
    %273 = arith.addf %269, %272 : vector<1x9x32xf32>
    %cst_89 = arith.constant dense<0.000000e+00> : vector<1x9xf32>
    %274 = vector.multi_reduction <add>, %273, %cst_89 [2] : vector<1x9x32xf32> to vector<1x9xf32>
    %275 = vector.shape_cast %274 : vector<1x9xf32> to vector<1x9x1xf32>
    %cst_90 = arith.constant 3.200000e+01 : f32
    %276 = vector.broadcast %cst_90 : f32 to vector<1x9x1xf32>
    %277 = arith.divf %275, %276 : vector<1x9x1xf32>
    %278 = vector.broadcast %277 : vector<1x9x1xf32> to vector<1x9x32xf32>
    %279 = arith.subf %273, %278 : vector<1x9x32xf32>
    %280 = arith.mulf %279, %279 : vector<1x9x32xf32>
    %cst_91 = arith.constant dense<0.000000e+00> : vector<1x9xf32>
    %281 = vector.multi_reduction <add>, %280, %cst_91 [2] : vector<1x9x32xf32> to vector<1x9xf32>
    %282 = vector.shape_cast %281 : vector<1x9xf32> to vector<1x9x1xf32>
    %cst_92 = arith.constant 3.200000e+01 : f32
    %283 = vector.broadcast %cst_92 : f32 to vector<1x9x1xf32>
    %284 = arith.divf %282, %283 : vector<1x9x1xf32>
    %285 = vector.broadcast %277 : vector<1x9x1xf32> to vector<1x9x32xf32>
    %286 = arith.subf %273, %285 : vector<1x9x32xf32>
    %cst_93 = arith.constant 9.99999974E-6 : f32
    %287 = vector.broadcast %cst_93 : f32 to vector<1x9x1xf32>
    %288 = arith.addf %284, %287 : vector<1x9x1xf32>
    %289 = math.rsqrt %288 : vector<1x9x1xf32>
    %290 = vector.broadcast %289 : vector<1x9x1xf32> to vector<1x9x32xf32>
    %291 = arith.mulf %286, %290 : vector<1x9x32xf32>
    %c0_94 = arith.constant 0 : index
    %c0_95 = arith.constant 0 : index
    %292 = vector.load %arg9[%c0_94, %c0_95] : memref<1x32xf32, #tpu.memory_space<vmem>>, vector<1x32xf32>
    %293 = vector.shape_cast %292 : vector<1x32xf32> to vector<1x1x32xf32>
    %294 = vector.broadcast %293 : vector<1x1x32xf32> to vector<1x9x32xf32>
    %295 = arith.mulf %291, %294 : vector<1x9x32xf32>
    %c0_96 = arith.constant 0 : index
    %c0_97 = arith.constant 0 : index
    %296 = vector.load %arg10[%c0_96, %c0_97] : memref<1x32xf32, #tpu.memory_space<vmem>>, vector<1x32xf32>
    %297 = vector.shape_cast %296 : vector<1x32xf32> to vector<1x1x32xf32>
    %298 = vector.broadcast %297 : vector<1x1x32xf32> to vector<1x9x32xf32>
    %299 = arith.addf %295, %298 : vector<1x9x32xf32>
    %300 = vector.shape_cast %299 : vector<1x9x32xf32> to vector<9x32xf32>
    %301 = arith.truncf %300 : vector<9x32xf32> to vector<9x32xbf16>
    %c0_98 = arith.constant 0 : index
    %c0_99 = arith.constant 0 : index
    %302 = vector.load %arg11[%c0_98, %c0_99] : memref<32x128xbf16, #tpu.memory_space<vmem>>, vector<32x128xbf16>
    %cst_100 = arith.constant dense<0.000000e+00> : vector<9x128xf32>
    %303 = tpu.matmul %301, %302, %cst_100 {dimension_numbers = #tpu.dot_dimension_numbers<[1], [0], [0], [1], [0, 0, 1, 1], [], []>} : vector<9x32xbf16>, vector<32x128xbf16>, vector<9x128xf32> -> vector<9x128xf32>
    %c0_101 = arith.constant 0 : index
    %c0_102 = arith.constant 0 : index
    %304 = vector.load %arg12[%c0_101, %c0_102] : memref<1x128xf32, #tpu.memory_space<vmem>>, vector<1x128xf32>
    %305 = vector.broadcast %304 : vector<1x128xf32> to vector<9x128xf32>
    %306 = arith.addf %303, %305 : vector<9x128xf32>
    %307 = arith.mulf %306, %306 : vector<9x128xf32>
    %308 = arith.mulf %306, %307 : vector<9x128xf32>
    %cst_103 = arith.constant 4.471500e-02 : f32
    %309 = vector.broadcast %cst_103 : f32 to vector<9x128xf32>
    %310 = arith.mulf %309, %308 : vector<9x128xf32>
    %311 = arith.addf %306, %310 : vector<9x128xf32>
    %cst_104 = arith.constant 0.797884583 : f32
    %312 = vector.broadcast %cst_104 : f32 to vector<9x128xf32>
    %313 = arith.mulf %312, %311 : vector<9x128xf32>
    %314 = math.tanh %313 : vector<9x128xf32>
    %cst_105 = arith.constant 1.000000e+00 : f32
    %315 = vector.broadcast %cst_105 : f32 to vector<9x128xf32>
    %316 = arith.addf %315, %314 : vector<9x128xf32>
    %cst_106 = arith.constant 5.000000e-01 : f32
    %317 = vector.broadcast %cst_106 : f32 to vector<9x128xf32>
    %318 = arith.mulf %317, %316 : vector<9x128xf32>
    %319 = arith.mulf %306, %318 : vector<9x128xf32>
    %320 = arith.truncf %319 : vector<9x128xf32> to vector<9x128xbf16>
    %c0_107 = arith.constant 0 : index
    %c0_108 = arith.constant 0 : index
    %321 = vector.load %arg13[%c0_107, %c0_108] : memref<128x32xbf16, #tpu.memory_space<vmem>>, vector<128x32xbf16>
    %cst_109 = arith.constant dense<0.000000e+00> : vector<9x32xf32>
    %322 = tpu.matmul %320, %321, %cst_109 {dimension_numbers = #tpu.dot_dimension_numbers<[1], [0], [0], [1], [0, 0, 1, 1], [], []>} : vector<9x128xbf16>, vector<128x32xbf16>, vector<9x32xf32> -> vector<9x32xf32>
    %c0_110 = arith.constant 0 : index
    %c0_111 = arith.constant 0 : index
    %323 = vector.load %arg14[%c0_110, %c0_111] : memref<1x32xf32, #tpu.memory_space<vmem>>, vector<1x32xf32>
    %324 = vector.broadcast %323 : vector<1x32xf32> to vector<9x32xf32>
    %325 = arith.addf %322, %324 : vector<9x32xf32>
    %326 = vector.shape_cast %325 : vector<9x32xf32> to vector<1x9x32xf32>
    %327 = arith.addf %273, %326 : vector<1x9x32xf32>
    %c0_112 = arith.constant 0 : index
    %c0_113 = arith.constant 0 : index
    %c0_114 = arith.constant 0 : index
    %328 = vector.load %arg15[%c0_112, %c0_113, %c0_114] : memref<1x9x32xf32, #tpu.memory_space<vmem>>, vector<1x9x32xf32>
    tpu.vector_store %arg15[%c0_112, %c0_113, %c0_114], %327 {strides = array<i32>} : memref<1x9x32xf32, #tpu.memory_space<vmem>>, vector<1x9x32xf32>,
    return
  }
  func.func @transform_0(%arg0: i32) -> (i32, i32, i32) {
    %c0_i32 = arith.constant 0 : i32
    %c0_i32_0 = arith.constant 0 : i32
    %c0_i32_1 = arith.constant 0 : i32
    return %arg0, %c0_i32, %c0_i32_0 : i32, i32, i32
  }
  func.func @transform_1(%arg0: i32) -> (i32, i32, i32) {
    %c0_i32 = arith.constant 0 : i32
    %c0_i32_0 = arith.constant 0 : i32
    %c0_i32_1 = arith.constant 0 : i32
    return %arg0, %c0_i32, %c0_i32_0 : i32, i32, i32
  }
  func.func @transform_2(%arg0: i32) -> (i32, i32, i32) {
    %c0_i32 = arith.constant 0 : i32
    %c0_i32_0 = arith.constant 0 : i32
    %c0_i32_1 = arith.constant 0 : i32
    return %arg0, %c0_i32, %c0_i32_0 : i32, i32, i32
  }
  func.func @transform_3(%arg0: i32) -> (i32, i32) {
    %c0_i32 = arith.constant 0 : i32
    %c0_i32_0 = arith.constant 0 : i32
    %c0_i32_1 = arith.constant 0 : i32
    return %c0_i32, %c0_i32_0 : i32, i32
  }
  func.func @transform_4(%arg0: i32) -> (i32, i32) {
    %c0_i32 = arith.constant 0 : i32
    %c0_i32_0 = arith.constant 0 : i32
    %c0_i32_1 = arith.constant 0 : i32
    return %c0_i32, %c0_i32_0 : i32, i32
  }
  func.func @transform_5(%arg0: i32) -> (i32, i32) {
    %c0_i32 = arith.constant 0 : i32
    %c0_i32_0 = arith.constant 0 : i32
    %c0_i32_1 = arith.constant 0 : i32
    return %c0_i32, %c0_i32_0 : i32, i32
  }
  func.func @transform_6(%arg0: i32) -> (i32, i32, i32) {
    %c0_i32 = arith.constant 0 : i32
    %c0_i32_0 = arith.constant 0 : i32
    %c0_i32_1 = arith.constant 0 : i32
    %c0_i32_2 = arith.constant 0 : i32
    return %c0_i32, %c0_i32_0, %c0_i32_1 : i32, i32, i32
  }
  func.func @transform_7(%arg0: i32) -> (i32, i32) {
    %c0_i32 = arith.constant 0 : i32
    %c0_i32_0 = arith.constant 0 : i32
    %c0_i32_1 = arith.constant 0 : i32
    return %c0_i32, %c0_i32_0 : i32, i32
  }
  func.func @transform_8(%arg0: i32) -> (i32, i32) {
    %c0_i32 = arith.constant 0 : i32
    %c0_i32_0 = arith.constant 0 : i32
    %c0_i32_1 = arith.constant 0 : i32
    return %c0_i32, %c0_i32_0 : i32, i32
  }
  func.func @transform_9(%arg0: i32) -> (i32, i32) {
    %c0_i32 = arith.constant 0 : i32
    %c0_i32_0 = arith.constant 0 : i32
    %c0_i32_1 = arith.constant 0 : i32
    return %c0_i32, %c0_i32_0 : i32, i32
  }
  func.func @transform_10(%arg0: i32) -> (i32, i32) {
    %c0_i32 = arith.constant 0 : i32
    %c0_i32_0 = arith.constant 0 : i32
    %c0_i32_1 = arith.constant 0 : i32
    return %c0_i32, %c0_i32_0 : i32, i32
  }
  func.func @transform_11(%arg0: i32) -> (i32, i32) {
    %c0_i32 = arith.constant 0 : i32
    %c0_i32_0 = arith.constant 0 : i32
    %c0_i32_1 = arith.constant 0 : i32
    return %c0_i32, %c0_i32_0 : i32, i32
  }
  func.func @transform_12(%arg0: i32) -> (i32, i32) {
    %c0_i32 = arith.constant 0 : i32
    %c0_i32_0 = arith.constant 0 : i32
    %c0_i32_1 = arith.constant 0 : i32
    return %c0_i32, %c0_i32_0 : i32, i32
  }
  func.func @transform_13(%arg0: i32) -> (i32, i32) {
    %c0_i32 = arith.constant 0 : i32
    %c0_i32_0 = arith.constant 0 : i32
    %c0_i32_1 = arith.constant 0 : i32
    return %c0_i32, %c0_i32_0 : i32, i32
  }
  func.func @transform_14(%arg0: i32) -> (i32, i32, i32) {
    %c0_i32 = arith.constant 0 : i32
    %c0_i32_0 = arith.constant 0 : i32
    %c0_i32_1 = arith.constant 0 : i32
    return %arg0, %c0_i32, %c0_i32_0 : i32, i32, i32
  }
}

</mosaic_0001>

<bundles_post_ra>
// kernel: _lambda_.2
= control target key start
LH: loop header
LB: loop body
LE: loop exit
PB: predicated region body
PF: predicated region fallthrough
CT: control target
= control target key end

     0   :  { %s2951_s29 = smov 0   ;;  %s3362_s0 = inlined_call_operand.vmem [shape: f32[2,9,32], index: 0, kind: input, shape index: {}]   ;;  %s3363_s1 = inlined_call_operand.vmem [shape: f32[2,1,9], index: 1, kind: input, shape index: {}]   ;;  %s3364_s2 = inlined_call_operand.vmem [shape: f32[2,9,1], index: 2, kind: input, shape index: {}]   ;;  %s3365_s3 = inlined_call_operand.vmem [shape: f32[1,32], index: 3, kind: input, shape index: {}]   ;;  %s3366_s4 = inlined_call_operand.vmem [shape: f32[1,32], index: 4, kind: input, shape index: {}]   ;;  %s3367_s5 = inlined_call_operand.vmem [shape: bf16[32,96], index: 5, kind: input, shape index: {}]   ;;  %s3368_s6 = inlined_call_operand.vmem [shape: bf16[8,4,32], index: 6, kind: input, shape index: {}]   ;;  %s3369_s7 = inlined_call_operand.vmem [shape: f32[1,32], index: 7, kind: input, shape index: {}]   ;;  %s3370_s8 = inlined_call_operand.vmem [shape: f32[1,32], index: 8, kind: input, shape index: {}]   ;;  %s3371_s9 = inlined_call_operand.vmem [shape: f32[1,32], index: 9, kind: input, shape index: {}]   ;;  %s3372_s10 = inlined_call_operand.vmem [shape: bf16[32,128], index: 10, kind: input, shape index: {}]   ;;  %s3373_s11 = inlined_call_operand.vmem [shape: f32[1,128], index: 11, kind: input, shape index: {}]   ;;  %s3374_s12 = inlined_call_operand.vmem [shape: bf16[128,32], index: 12, kind: input, shape index: {}]   ;;  %s3375_s13 = inlined_call_operand.vmem [shape: f32[1,32], index: 13, kind: input, shape index: {}]   ;;  %s3376_s14 = inlined_call_operand.vmem [shape: f32[2,9,32], index: 14, kind: output, shape index: {}]  }
   0x1 LB: > { %s2402_s30 = sadd.s32 4294967295, %s2847_s29   ;;  %p2406_p0 = scmp.ge.s32.totalorder %s2847_s29, 1  ;;  %s2847_s29 = sphi %s2951_s29, %s24_s29  }
   0x2   : > { %p430_p1 = scmp.lt.s32.totalorder %s2847_s29, 3 }
   0x4   : > { %p431_p2 = pnand %p2406_p0, %p430_p1 }
   0x5   : > { %p484_p3 = scmp.lt.s32.totalorder (!%p431_p2), %s2402_s30, 1  ;;  %s2852_s17 = smov (!%p431_p2), 96  }
   0x6   : > { %434 = sbr.rel (%p431_p2) target bundleno = 6147 (0x1803), region = 76  ;;  %s2854_s22 = smov (!%p431_p2), 124  }
   0x7   : > { %s2856_s23 = smov (!%p431_p2), 92   ;;  %s2857_s24 = smov (!%p431_p2), 88  }
   0x8   : > { %s2858_s25 = smov (!%p431_p2), 60   ;;  %s2859_s26 = smov (!%p431_p2), 120  }
   0x9   : > { %s2860_s19 = smov (!%p431_p2), 56   ;;  %s2861_s20 = smov (!%p431_p2), 116  }
   0xa   : > { %s2866_s28 = smov (!%p431_p2), 48   ;;  %s2874_s27 = smov (!%p431_p2), 68  }
   0xb   : > { %s3382_s30 = smov (!%p484_p3, %s2402_s30), 1  ;;  %vm505_vm0 = vcmask 261120   ;;  %vm509_vm1 = vcmask 253952   ;;  %v2751_v14 = vld [vmem:[%s3367_s5 + $0x8] sm:$0xff]   ;;  %v2849_v15 = vmov 0.0   ;;  %vm2850_vm2 = vmmov 0  }
   0xc   : > { %s2962_s15 = sshll.u32 %s3382_s30, 4  ;;  %2534 = vmatprep.subr.bf16.mxu1 %v2849_v15  ;;  %2538 = vmatprep.mubr.msk.bf16.mxu1 %vm2850_vm2, %v2849_v15  ;;  %v2752_v16 = vld [vmem:[%s3367_s5] sm:$0xff]   ;;  %v2851_v36 = vmov 0   ;;  %vm652_vm3 = vcmask 31744   ;;  %s491_s21 = scalar_lea.vmem %s3363_s1, %s3382_s30  ;;  %v640_v49 = vlaneseq  ;;  %vm702_vm7 = vcmask 72704  }
   0xd   : > { %s2968_s18 = scalar_lea.vmem %s3362_s0, %s2962_s15  ;;  %2535 = vmatpush3.bf16.msra.mxu1 %v2751_v14  ;;  %2560 = vmatprep.subr.bf16.mxu0 %v2849_v15  ;;  %v2413_v25 = vld [vmem:[%s3365_s3] ss:$0 sm:$0xff]  ;;  %s496_s16 = scalar_lea.vmem %s3364_s2, %s2962_s15  ;;  %vm706_vm10 = vcmask 65536   ;;  %vm732_vm12 = vcmask 1043456   ;;  %vm733_vm13 = vcmask 1044480   ;;  %vm914_vm14 = vcmask 1041408  }
   0xe   : > { %v503_v0 = vld [vmem:[%s2968_s18] sm:$0xff]  ;;  %v504_v1 = vld [vmem:[%s2968_s18 + $0x8] sm:$0x1]  ;;  %2536 = vmatprep.subr.bf16.mxu1 %v2849_v15  ;;  %2562 = vmatprep.mubr.msk.bf16.mxu0 %vm2850_vm2, %v2849_v15  ;;  %v644_v50 = vand.u32 127, %v640_v49  ;;  %v641_v52 = vshrl.u32 %v640_v49, 7  ;;  %s2853_s30 = smov 64  }
   0xf   : > { %v506_v2 = vsel %vm505_vm0, %v503_v0, 0.0  ;;  %v510_v3 = vsel %vm509_vm1, %v504_v1, 0.0  ;;  %v2414_v29 = vld [vmem:[%s3366_s4] ss:$0 sm:$0xff]  ;;  %2749 = vset.pattern.permute.xlu1 %v2851_v36  ;;  %2750 = vset.pattern.permute.xlu0 %v2851_v36  ;;  %v618_v42 = vld [vmem:[%s496_s16 + $0x8] sm:$0x1] }
  0x10   : > { %507 = vadd.xlane.f32.xlu0 %v506_v2  ;;  %v617_v37 = vld [vmem:[%s496_s16] sm:$0xff]  ;;  %vm645_vm4 = vcmp.le.s32.totalorder %v644_v50, %v641_v52  ;;  %v642_v54 = vadd.s32 8, %v641_v52  ;;  %v2855_v2 = vmov 65535   ;;  %s2867_s16 = smov 108  }
  0x11   : > { %2537 = vmatpush3.bf16.msra.mxu1 %v2752_v16  ;;  %v2418_v47 = vld [vmem:[%s491_s21] ss:$0 sm:$0xff]  ;;  %s2862_s21 = smov 84  }
  0x12   : > { %2542 = vmatprep.subr.bf16.mxu1 %v2849_v15  ;;  %vm646_vm8 = vcmp.le.s32.totalorder %v644_v50, %v642_v54 }
  0x14   : > { %511 = vadd.xlane.f32.xlu0 %v510_v3  ;;  %v734_v3 = vsel %vm732_vm12, 4294967295, %v2855_v2  ;;  %v2423_v2 = vld [vmem:[%s3368_s6 + $0x2] sm:$0x3] }
  0x99   : > { %v508_v4 = vpop.xlane.xlu0 %507 }
  0x9a   : > { %v514_v5 = vmul.f32 0.03125, %v508_v4 }
  0x9c   : > { %v516_v6 = vsub.f32 %v503_v0, %v514_v5 }
  0x9d   : > { %v512_v7 = vpop.xlane.xlu0 %511 }
  0x9e   : > { %v515_v8 = vmul.f32 0.03125, %v512_v7  ;;  %v518_v9 = vmul.f32 %v516_v6, %v516_v6 }
  0xa0   : > { %v517_v10 = vsub.f32 %v504_v1, %v515_v8  ;;  %v520_v11 = vsel %vm505_vm0, %v518_v9, 0.0 }
  0xa1   : > { %521 = vadd.xlane.f32.xlu1 %v520_v11 }
  0xa2   : > { %v519_v12 = vmul.f32 %v517_v10, %v517_v10 }
  0xa4   : > { %v523_v13 = vsel %vm509_vm1, %v519_v12, 0.0 }
  0xa5   : > { %524 = vadd.xlane.f32.xlu1 %v523_v13 }
  0xb6   : > { %622 = vperm.xlu1 %2749, %v617_v37  }
  0xba   : > { %627 = vperm.xlu1 %2749, %v618_v42  }
 0x12a   : > { %v522_v17 = vpop.xlane.xlu1 %521 }
 0x12b   : > { %v526_v18 = vmul.f32 0.03125, %v522_v17 }
 0x12d   : > { %v528_v19 = vadd.f32 1e-05, %v526_v18 }
 0x12e   : > { %v525_v20 = vpop.xlane.xlu1 %524 }
 0x12f   : > { %2763 = vrsqrt.f32 %v528_v19  ;;  %v527_v21 = vmul.f32 0.03125, %v525_v20 }
 0x131   : > { %v529_v22 = vadd.f32 1e-05, %v527_v21 }
 0x132   : > { %v623_v48 = vpop.permute.xlu1 %622 }
 0x133   : > { %2765 = vrsqrt.f32 %v529_v22  ;;  %v636_v51 = vmul.f32 %v2418_v47, %v623_v48 }
 0x135   : > { %vm638_vm5 = vcmp.gt.f32.partialorder %v636_v51, 0.5 }
 0x136   : > { %v628_v53 = vpop.permute.xlu1 %627  ;;  %vm3018_vm6 = vmand %vm638_vm5, %vm645_vm4 }
 0x137   : > { %v637_v55 = vmul.f32 %v2418_v47, %v628_v53 }
 0x139   : > { %vm639_vm9 = vcmp.gt.f32.partialorder %v637_v55, 0.5 }
 0x13a   : > { %vm3025_vm11 = vmand %vm639_vm9, %vm646_vm8 }
 0x13c   : > { %v2764_v23 = vpop.eup %2763 }
 0x13d   : > { %v532_v24 = vmul.f32 %v2764_v23, %v516_v6  ;;  %v3034_v6 = vsel %vm733_vm13, %v734_v3, 0  ;;  %v916_v3 = vsel %vm914_vm14, %v2423_v2, 0 }
 0x13f   : > { %v541_v28 = vmul.f32 %v2413_v25, %v532_v24 }
 0x140   : > { %v2766_v26 = vpop.eup %2765 }
 0x141   : > { %v533_v27 = vmul.f32 %v2766_v26, %v517_v10  ;;  %v550_v31 = vadd.f32 %v2414_v29, %v541_v28 }
 0x143   : > { %v542_v30 = vmul.f32 %v2413_v25, %v533_v27 }
 0x145   : > { %v551_v32 = vadd.f32 %v2414_v29, %v542_v30 }
 0x147   : > { %v552_v33 = vpack.c.bf16 %v551_v32, %v550_v31 }
 0x149   : > { %2539 = vmatmul.mubr.msk.bf16.vlgmr.msra.gmra.mxu1 %vm505_vm0, %v552_v33 }
 0x14a   : > { %2544 = vmatprep.mubr.msk.bf16.mxu1 %vm2850_vm2, %v2849_v15 }
 0x209   : > { %v606_v34 = vpop.f32.mrf.mxu1 }
 0x20a   : > { %v613_v39 = vmul.f32 0.17677669, %v606_v34 }
 0x20b   : > { %v2540_v35 = vpop.f32.mrf.mxu1 }
 0x20d   : > { %v609_v38 = vpop.f32.mrf.mxu1 }
 0x20e   : > { %v614_v40 = vmul.f32 0.17677669, %v609_v38  ;;  %v3003_v41 = vpack.c.bf16 %v609_v38, %v606_v34 }
 0x20f   : > { %v2541_v43 = vpop.f32.mrf.mxu1 }
 0x210   : > { %v3005_v44 = vpack.c.bf16 %v614_v40, %v613_v39  ;;  %650 = vrot.lane.b32.xlu0 %v3003_v41, %s2852_s17  ;;  %s2868_s17 = smov 76  }
 0x282   : > { %v651_v45 = vpop.permute.xlu0 %650 }
 0x283   : > { %v657_v46 = vsel %vm652_vm3, %v651_v45, 0 }
 0x284   : > { %2543 = vmatpush3.bf16.xpose.msra.mxu1 %v657_v46 }
 0x285   : > { %2548 = vmatprep.subr.bf16.mxu1 %v2849_v15 }
 0x28b   : > { %2545 = vmatmul.mubr.msk.bf16.vlgmr.msra.gmra.mxu1 %vm652_vm3, %v3005_v44 }
 0x28c   : > { %2550 = vmatprep.mubr.msk.bf16.mxu1 %vm2850_vm2, %v2849_v15 }
 0x34b   : > { %v693_v57 = vpop.f32.mrf.mxu1 }
 0x34c   : > { %v700_v58 = vsel %vm3018_vm6, %v693_v57, -3.4028235e+38 }
 0x34d   : > { %v2546_v59 = vpop.f32.mrf.mxu1  ;;  %v703_v60 = vsel %vm702_vm7, %v700_v58, -inf }
 0x34e   : > { %704 = vmax.xlane.f32.xlu1 %v703_v60  ;;  %v781_v60 = vld [vmem:[%s3368_s6] sm:$0x3] }
 0x34f   : > { %v696_v62 = vpop.f32.mrf.mxu1 }
 0x350   : > { %v701_v63 = vsel %vm3025_vm11, %v696_v62, -3.4028235e+38 }
 0x351   : > { %v2547_v0 = vpop.f32.mrf.mxu1  ;;  %v707_v1 = vsel %vm706_vm10, %v701_v63, -inf }
 0x352   : > { %708 = vmax.xlane.f32.xlu0 %v707_v1  ;;  %v963_v1 = vsel %vm914_vm14, %v781_v60, 0 }
 0x35f   : > { %727 = vrot.lane.b32.xlu1 %v3003_v41, %s2853_s30  ;;  %s2870_s30 = smov 44  }
 0x363   : > { %783 = vrot.lane.b32.xlu1 %v3005_v44, %s2854_s22  ;;  %s2871_s22 = smov 104  }
 0x3d7   : > { %v705_v4 = vpop.xlane.xlu1 %704 }
 0x3d8   : > { %v710_v5 = vsub.f32 %v700_v58, %v705_v4 }
 0x3da   : > { %v712_v7 = vmul.f32 1.442695, %v710_v5 }
 0x3db   : > { %v709_v8 = vpop.xlane.xlu0 %708  ;;  %v728_v9 = vpop.permute.xlu1 %727 }
 0x3dc   : > { %2767 = vpow2.f32 %v712_v7  ;;  %v711_v10 = vsub.f32 %v701_v63, %v709_v8  ;;  %v737_v11 = vand.u32 %v3034_v6, %v728_v9 }
 0x3de   : > { %v714_v12 = vmul.f32 1.442695, %v711_v10  ;;  %2549 = vmatpush3.bf16.msra.mxu1 %v737_v11 }
 0x3df   : > { %2554 = vmatprep.subr.bf16.mxu1 %v2849_v15  ;;  %v784_v27 = vpop.permute.xlu1 %783 }
 0x3e0   : > { %2769 = vpow2.f32 %v714_v12 }
 0x3e9   : > { %v2768_v13 = vpop.eup %2767 }
 0x3ea   : > { %v716_v14 = vsel %vm702_vm7, %v2768_v13, 0.0 }
 0x3eb   : > { %717 = vadd.xlane.f32.xlu0 %v716_v14 }
 0x3ed   : > { %v2770_v16 = vpop.eup %2769 }
 0x3ee   : > { %v719_v17 = vsel %vm706_vm10, %v2770_v16, 0.0 }
 0x3ef   : > { %720 = vadd.xlane.f32.xlu0 %v719_v17 }
 0x405   : > { %785 = vrot.lane.b32.xlu0 %v3003_v41, %s2856_s23  ;;  %s2863_s23 = smov 80  }
 0x474   : > { %v718_v18 = vpop.xlane.xlu0 %717 }
 0x475   : > { %2771 = vrcp.f32 %v718_v18 }
 0x478   : > { %v721_v19 = vpop.xlane.xlu0 %720 }
 0x479   : > { %2773 = vrcp.f32 %v721_v19 }
 0x47c   : > { %v786_v24 = vpop.permute.xlu0 %785 }
 0x47d   : > { %v791_v26 = vsel %vm652_vm3, %v786_v24, 0 }
 0x482   : > { %v2772_v20 = vpop.eup %2771 }
 0x483   : > { %v724_v22 = vmul.f32 %v2772_v20, %v2768_v13 }
 0x486   : > { %v2774_v21 = vpop.eup %2773 }
 0x487   : > { %v725_v23 = vmul.f32 %v2774_v21, %v2770_v16 }
 0x489   : > { %v726_v25 = vpack.c.bf16 %v725_v23, %v724_v22 }
 0x48b   : > { %2551 = vmatmul.mubr.msk.bf16.vlgmr.msra.gmra.mxu1 %vm702_vm7, %v726_v25 }
 0x48c   : > { %2555 = vmatpush3.bf16.xpose.msra.mxu1 %v791_v26  ;;  %2556 = vmatprep.mubr.msk.bf16.mxu1 %vm2850_vm2, %v2849_v15 }
 0x48d   : > { %2566 = vmatprep.subr.bf16.mxu1 %v2849_v15 }
 0x493   : > { %2557 = vmatmul.mubr.msk.bf16.vlgmr.msra.gmra.mxu1 %vm652_vm3, %v784_v27 }
 0x494   : > { %2568 = vmatprep.mubr.msk.bf16.mxu1 %vm2850_vm2, %v2849_v15  ;;  %2567 = vmatpush3.bf16.msra.mxu1 %v916_v3 }
 0x495   : > { %2578 = vmatprep.subr.bf16.mxu1 %v2849_v15 }
 0x54b   : > { %v773_v28 = vpop.f32.mrf.mxu1 }
 0x54d   : > { %v2552_v29 = vpop.f32.mrf.mxu1 }
 0x54f   : > { %v776_v30 = vpop.f32.mrf.mxu1 }
 0x550   : > { %v780_v31 = vpack.c.bf16 %v776_v30, %v773_v28 }
 0x551   : > { %v2553_v32 = vpop.f32.mrf.mxu1 }
 0x553   : > { %v827_v33 = vpop.f32.mrf.mxu1 }
 0x554   : > { %v834_v34 = vsel %vm3018_vm6, %v827_v33, -3.4028235e+38 }
 0x555   : > { %v2558_v35 = vpop.f32.mrf.mxu1  ;;  %v836_v36 = vsel %vm702_vm7, %v834_v34, -inf }
 0x556   : > { %837 = vmax.xlane.f32.xlu1 %v836_v36 }
 0x557   : > { %v830_v37 = vpop.f32.mrf.mxu1 }
 0x558   : > { %v835_v38 = vsel %vm3025_vm11, %v830_v37, -3.4028235e+38 }
 0x559   : > { %v2559_v39 = vpop.f32.mrf.mxu1  ;;  %v839_v40 = vsel %vm706_vm10, %v835_v38, -inf }
 0x55a   : > { %840 = vmax.xlane.f32.xlu0 %v839_v40 }
 0x5df   : > { %v838_v42 = vpop.xlane.xlu1 %837 }
 0x5e0   : > { %v842_v43 = vsub.f32 %v834_v34, %v838_v42 }
 0x5e2   : > { %v844_v45 = vmul.f32 1.442695, %v842_v43 }
 0x5e3   : > { %v841_v46 = vpop.xlane.xlu0 %840 }
 0x5e4   : > { %2775 = vpow2.f32 %v844_v45  ;;  %v843_v47 = vsub.f32 %v835_v38, %v841_v46 }
 0x5e6   : > { %v846_v48 = vmul.f32 1.442695, %v843_v47 }
 0x5e8   : > { %2777 = vpow2.f32 %v846_v48 }
 0x5f1   : > { %v2776_v49 = vpop.eup %2775 }
 0x5f2   : > { %v848_v50 = vsel %vm702_vm7, %v2776_v49, 0.0 }
 0x5f3   : > { %849 = vadd.xlane.f32.xlu0 %v848_v50 }
 0x5f5   : > { %v2778_v51 = vpop.eup %2777 }
 0x5f6   : > { %v851_v52 = vsel %vm706_vm10, %v2778_v51, 0.0 }
 0x5f7   : > { %852 = vadd.xlane.f32.xlu1 %v851_v52 }
 0x608   : > { %1008 = vrot.lane.b32.xlu1 %v3003_v41, %s2857_s24  ;;  %s2864_s24 = smov 52  }
 0x609   : > { %859 = vrot.lane.b32.xlu0 %v3003_v41, %s2858_s25  ;;  %s2865_s25 = smov 112  }
 0x60c   : > { %1006 = vrot.lane.b32.xlu1 %v3005_v44, %s2859_s26  ;;  %s2873_s26 = smov 100  }
 0x67c   : > { %v850_v53 = vpop.xlane.xlu0 %849 }
 0x67d   : > { %2779 = vrcp.f32 %v850_v53 }
 0x680   : > { %v853_v54 = vpop.xlane.xlu1 %852  ;;  %v860_v55 = vpop.permute.xlu0 %859 }
 0x681   : > { %2781 = vrcp.f32 %v853_v54  ;;  %v865_v57 = vand.u32 %v860_v55, %v3034_v6  ;;  %v2428_v54 = vld [vmem:[%s3368_s6 + $0x4] sm:$0x3] }
 0x682   : > { %v1138_v55 = vsel %vm914_vm14, %v2428_v54, 0 }
 0x683   : > { %2561 = vmatpush3.bf16.msra.mxu0 %v865_v57 }
 0x684   : > { %2572 = vmatprep.subr.bf16.mxu0 %v2849_v15  ;;  %v1009_v7 = vpop.permute.xlu1 %1008 }
 0x685   : > { %v1014_v11 = vsel %vm652_vm3, %v1009_v7, 0 }
 0x688   : > { %v1007_v16 = vpop.permute.xlu1 %1006 }
 0x68a   : > { %v2780_v58 = vpop.eup %2779 }
 0x68b   : > { %v856_v62 = vmul.f32 %v2780_v58, %v2776_v49 }
 0x68e   : > { %v2782_v59 = vpop.eup %2781 }
 0x68f   : > { %v857_v63 = vmul.f32 %v2782_v59, %v2778_v51 }
 0x691   : > { %v858_v0 = vpack.c.bf16 %v857_v63, %v856_v62 }
 0x693   : > { %2563 = vmatmul.mubr.msk.bf16.vlgmr.msra.gmra.mxu0 %vm702_vm7, %v858_v0 }
 0x694   : > { %2573 = vmatpush3.bf16.msra.mxu0 %v963_v1  ;;  %2574 = vmatprep.mubr.msk.bf16.mxu0 %vm2850_vm2, %v2849_v15 }
 0x695   : > { %2584 = vmatprep.subr.bf16.mxu0 %v2849_v15 }
 0x69b   : > { %2575 = vmatmul.mubr.msk.bf16.vlgmr.msra.gmra.mxu0 %vm652_vm3, %v780_v31 }
 0x69c   : > { %2586 = vmatprep.mubr.msk.bf16.mxu0 %vm2850_vm2, %v2849_v15 }
 0x753   : > { %v901_v4 = vpop.f32.mrf.mxu0 }
 0x755   : > { %v2564_v5 = vpop.f32.mrf.mxu0 }
 0x757   : > { %v904_v8 = vpop.f32.mrf.mxu0 }
 0x758   : > { %v908_v9 = vpack.c.bf16 %v904_v8, %v901_v4 }
 0x759   : > { %v2565_v10 = vpop.f32.mrf.mxu0 }
 0x75a   : > { %2569 = vmatmul.mubr.msk.bf16.vlgmr.msra.gmra.mxu1 %vm652_vm3, %v908_v9 }
 0x75b   : > { %2579 = vmatpush3.bf16.xpose.msra.mxu1 %v1014_v11  ;;  %v3080_v12 = vpop.f32.mrf.mxu0  ;;  %2580 = vmatprep.mubr.msk.bf16.mxu1 %vm2850_vm2, %v2849_v15 }
 0x75c   : > { %2590 = vmatprep.subr.bf16.mxu1 %v2849_v15 }
 0x75d   : > { %v2576_v13 = vpop.f32.mrf.mxu0 }
 0x75f   : > { %v3085_v14 = vpop.f32.mrf.mxu0 }
 0x761   : > { %v2577_v17 = vpop.f32.mrf.mxu0 }
 0x762   : > { %2581 = vmatmul.mubr.msk.bf16.vlgmr.msra.gmra.mxu1 %vm652_vm3, %v1007_v16 }
 0x763   : > { %2592 = vmatprep.mubr.msk.bf16.mxu1 %vm2850_vm2, %v2849_v15  ;;  %2591 = vmatpush3.bf16.msra.mxu1 %v1138_v55 }
 0x764   : > { %2602 = vmatprep.subr.bf16.mxu1 %v2849_v15 }
 0x81a   : > { %v3090_v18 = vpop.f32.mrf.mxu1 }
 0x81c   : > { %v2570_v19 = vpop.f32.mrf.mxu1 }
 0x81e   : > { %v3092_v20 = vpop.f32.mrf.mxu1 }
 0x820   : > { %v2571_v21 = vpop.f32.mrf.mxu1 }
 0x822   : > { %v1050_v22 = vpop.f32.mrf.mxu1 }
 0x823   : > { %v1057_v23 = vsel %vm3018_vm6, %v1050_v22, -3.4028235e+38 }
 0x824   : > { %v2582_v24 = vpop.f32.mrf.mxu1  ;;  %v1059_v25 = vsel %vm702_vm7, %v1057_v23, -inf }
 0x825   : > { %1060 = vmax.xlane.f32.xlu1 %v1059_v25 }
 0x826   : > { %v1053_v26 = vpop.f32.mrf.mxu1 }
 0x827   : > { %v1058_v27 = vsel %vm3025_vm11, %v1053_v26, -3.4028235e+38 }
 0x828   : > { %v2583_v28 = vpop.f32.mrf.mxu1  ;;  %v1062_v29 = vsel %vm706_vm10, %v1058_v27, -inf }
 0x829   : > { %1063 = vmax.xlane.f32.xlu0 %v1062_v29 }
 0x836   : > { %1082 = vrot.lane.b32.xlu1 %v3003_v41, %s2860_s19 }
 0x83a   : > { %1183 = vrot.lane.b32.xlu1 %v3005_v44, %s2861_s20 }
 0x8ae   : > { %v1061_v30 = vpop.xlane.xlu1 %1060 }
 0x8af   : > { %v1065_v31 = vsub.f32 %v1057_v23, %v1061_v30  ;;  %v1000_v23 = vadd.f32 %v3080_v12, %v3090_v18 }
 0x8b1   : > { %v1067_v32 = vmul.f32 1.442695, %v1065_v31 }
 0x8b2   : > { %v1083_v33 = vpop.permute.xlu1 %1082  ;;  %v1064_v34 = vpop.xlane.xlu0 %1063 }
 0x8b3   : > { %2783 = vpow2.f32 %v1067_v32  ;;  %v1088_v35 = vand.u32 %v1083_v33, %v3034_v6  ;;  %v1066_v36 = vsub.f32 %v1058_v27, %v1064_v34  ;;  %v1003_v27 = vadd.f32 %v3085_v14, %v3092_v20 }
 0x8b5   : > { %v1069_v37 = vmul.f32 1.442695, %v1066_v36  ;;  %2585 = vmatpush3.bf16.msra.mxu0 %v1088_v35 }
 0x8b6   : > { %2596 = vmatprep.subr.bf16.mxu0 %v2849_v15  ;;  %v1184_v53 = vpop.permute.xlu1 %1183 }
 0x8b7   : > { %2785 = vpow2.f32 %v1069_v37 }
 0x8c0   : > { %v2784_v38 = vpop.eup %2783 }
 0x8c1   : > { %v1071_v39 = vsel %vm702_vm7, %v2784_v38, 0.0 }
 0x8c2   : > { %1072 = vadd.xlane.f32.xlu0 %v1071_v39  ;;  %v2432_v39 = vld [vmem:[%s3368_s6 + $0x6] sm:$0x3] }
 0x8c4   : > { %v2786_v40 = vpop.eup %2785 }
 0x8c5   : > { %v1074_v42 = vsel %vm706_vm10, %v2786_v40, 0.0 }
 0x8c6   : > { %1075 = vadd.xlane.f32.xlu0 %v1074_v42 }
 0x8dc   : > { %1185 = vrot.lane.b32.xlu0 %v3003_v41, %s2862_s21  ;;  %s2869_s21 = smov 72  }
 0x94b   : > { %v1073_v43 = vpop.xlane.xlu0 %1072 }
 0x94c   : > { %2787 = vrcp.f32 %v1073_v43 }
 0x94f   : > { %v1076_v45 = vpop.xlane.xlu0 %1075 }
 0x950   : > { %2789 = vrcp.f32 %v1076_v45 }
 0x953   : > { %v1186_v50 = vpop.permute.xlu0 %1185 }
 0x954   : > { %v1191_v52 = vsel %vm652_vm3, %v1186_v50, 0 }
 0x959   : > { %v2788_v46 = vpop.eup %2787 }
 0x95a   : > { %v1079_v48 = vmul.f32 %v2788_v46, %v2784_v38 }
 0x95d   : > { %v2790_v47 = vpop.eup %2789 }
 0x95e   : > { %v1080_v49 = vmul.f32 %v2790_v47, %v2786_v40  ;;  %v1315_v40 = vsel %vm914_vm14, %v2432_v39, 0 }
 0x960   : > { %v1081_v51 = vpack.c.bf16 %v1080_v49, %v1079_v48 }
 0x962   : > { %2587 = vmatmul.mubr.msk.bf16.vlgmr.msra.gmra.mxu0 %vm702_vm7, %v1081_v51 }
 0x963   : > { %2597 = vmatpush3.bf16.xpose.msra.mxu0 %v1191_v52  ;;  %2598 = vmatprep.mubr.msk.bf16.mxu0 %vm2850_vm2, %v2849_v15 }
 0x964   : > { %2608 = vmatprep.subr.bf16.mxu0 %v2849_v15 }
 0x96a   : > { %2599 = vmatmul.mubr.msk.bf16.vlgmr.msra.gmra.mxu0 %vm652_vm3, %v1184_v53 }
 0x96b   : > { %2610 = vmatprep.mubr.msk.bf16.mxu0 %vm2850_vm2, %v2849_v15  ;;  %2609 = vmatpush3.bf16.msra.mxu0 %v1315_v40 }
 0x96c   : > { %2620 = vmatprep.subr.bf16.mxu0 %v2849_v15 }
 0xa22   : > { %v1124_v57 = vpop.f32.mrf.mxu0 }
 0xa24   : > { %v2588_v58 = vpop.f32.mrf.mxu0 }
 0xa26   : > { %v1127_v59 = vpop.f32.mrf.mxu0 }
 0xa27   : > { %v1131_v60 = vpack.c.bf16 %v1127_v59, %v1124_v57 }
 0xa28   : > { %v2589_v62 = vpop.f32.mrf.mxu0 }
 0xa29   : > { %2593 = vmatmul.mubr.msk.bf16.vlgmr.msra.gmra.mxu1 %vm652_vm3, %v1131_v60 }
 0xa2a   : > { %v1227_v63 = vpop.f32.mrf.mxu0  ;;  %2604 = vmatprep.mubr.msk.bf16.mxu1 %vm2850_vm2, %v2849_v15 }
 0xa2b   : > { %v1234_v0 = vsel %vm3018_vm6, %v1227_v63, -3.4028235e+38 }
 0xa2c   : > { %v2600_v1 = vpop.f32.mrf.mxu0  ;;  %v1236_v2 = vsel %vm702_vm7, %v1234_v0, -inf }
 0xa2d   : > { %1237 = vmax.xlane.f32.xlu1 %v1236_v2 }
 0xa2e   : > { %v1230_v3 = vpop.f32.mrf.mxu0 }
 0xa2f   : > { %v1235_v4 = vsel %vm3025_vm11, %v1230_v3, -3.4028235e+38 }
 0xa30   : > { %v2601_v5 = vpop.f32.mrf.mxu0  ;;  %v1239_v7 = vsel %vm706_vm10, %v1235_v4, -inf }
 0xa31   : > { %1240 = vmax.xlane.f32.xlu0 %v1239_v7 }
 0xab6   : > { %v1238_v8 = vpop.xlane.xlu1 %1237 }
 0xab7   : > { %v1242_v9 = vsub.f32 %v1234_v0, %v1238_v8 }
 0xab9   : > { %v1244_v10 = vmul.f32 1.442695, %v1242_v9 }
 0xaba   : > { %v1241_v11 = vpop.xlane.xlu0 %1240 }
 0xabb   : > { %2791 = vpow2.f32 %v1244_v10  ;;  %v1243_v13 = vsub.f32 %v1235_v4, %v1241_v11 }
 0xabd   : > { %v1246_v16 = vmul.f32 1.442695, %v1243_v13 }
 0xabf   : > { %2793 = vpow2.f32 %v1246_v16 }
 0xac8   : > { %v2792_v17 = vpop.eup %2791 }
 0xac9   : > { %v1248_v19 = vsel %vm702_vm7, %v2792_v17, 0.0 }
 0xaca   : > { %1249 = vadd.xlane.f32.xlu0 %v1248_v19 }
 0xacc   : > { %v2794_v21 = vpop.eup %2793 }
 0xacd   : > { %v1251_v22 = vsel %vm706_vm10, %v2794_v21, 0.0 }
 0xace   : > { %1252 = vadd.xlane.f32.xlu1 %v1251_v22 }
 0xadf   : > { %1362 = vrot.lane.b32.xlu1 %v3003_v41, %s2863_s23  ;;  %s501_s23 = scalar_lea.vmem %s3376_s14, %s2962_s15 }
 0xae0   : > { %1259 = vrot.lane.b32.xlu0 %v3003_v41, %s2864_s24 }
 0xae3   : > { %1360 = vrot.lane.b32.xlu1 %v3005_v44, %s2865_s25  ;;  %s2872_s25 = smov 40  }
 0xae9   : > { %v1174_v24 = vpop.f32.mrf.mxu1 }
 0xaea   : > { %v3136_v25 = vadd.f32 %v1174_v24, %v1000_v23 }
 0xaeb   : > { %v2594_v26 = vpop.f32.mrf.mxu1 }
 0xaed   : > { %v1177_v28 = vpop.f32.mrf.mxu1 }
 0xaee   : > { %v3140_v29 = vadd.f32 %v1177_v28, %v1003_v27  ;;  %v2436_v28 = vld [vmem:[%s3368_s6 + $0x8] sm:$0x3] }
 0xaef   : > { %v2595_v30 = vpop.f32.mrf.mxu1 }
 0xb53   : > { %v1250_v31 = vpop.xlane.xlu0 %1249 }
 0xb54   : > { %2795 = vrcp.f32 %v1250_v31 }
 0xb57   : > { %v1253_v32 = vpop.xlane.xlu1 %1252  ;;  %v1260_v33 = vpop.permute.xlu0 %1259 }
 0xb58   : > { %2797 = vrcp.f32 %v1253_v32  ;;  %v1265_v34 = vand.u32 %v1260_v33, %v3034_v6 }
 0xb5a   : > { %2603 = vmatpush3.bf16.msra.mxu1 %v1265_v34 }
 0xb5b   : > { %2614 = vmatprep.subr.bf16.mxu1 %v2849_v15  ;;  %v1363_v37 = vpop.permute.xlu1 %1362 }
 0xb5c   : > { %v1368_v20 = vsel %vm652_vm3, %v1363_v37, 0 }
 0xb5f   : > { %v1361_v38 = vpop.permute.xlu1 %1360 }
 0xb61   : > { %v2796_v12 = vpop.eup %2795 }
 0xb62   : > { %v1256_v35 = vmul.f32 %v2796_v12, %v2792_v17 }
 0xb65   : > { %v2798_v18 = vpop.eup %2797 }
 0xb66   : > { %v1257_v36 = vmul.f32 %v2798_v18, %v2794_v21 }
 0xb68   : > { %v1258_v14 = vpack.c.bf16 %v1257_v36, %v1256_v35 }
 0xb6a   : > { %2605 = vmatmul.mubr.msk.bf16.vlgmr.msra.gmra.mxu1 %vm702_vm7, %v1258_v14 }
 0xb6b   : > { %2615 = vmatpush3.bf16.xpose.msra.mxu1 %v1368_v20  ;;  %2616 = vmatprep.mubr.msk.bf16.mxu1 %vm2850_vm2, %v2849_v15 }
 0xb6c   : > { %2626 = vmatprep.subr.bf16.mxu1 %v2849_v15 }
 0xb72   : > { %2617 = vmatmul.mubr.msk.bf16.vlgmr.msra.gmra.mxu1 %vm652_vm3, %v1361_v38 }
 0xb73   : > { %2628 = vmatprep.mubr.msk.bf16.mxu1 %vm2850_vm2, %v2849_v15 }
 0xc2a   : > { %v1301_v42 = vpop.f32.mrf.mxu1 }
 0xc2c   : > { %v2606_v43 = vpop.f32.mrf.mxu1 }
 0xc2e   : > { %v1304_v45 = vpop.f32.mrf.mxu1 }
 0xc2f   : > { %v1308_v46 = vpack.c.bf16 %v1304_v45, %v1301_v42 }
 0xc30   : > { %v2607_v47 = vpop.f32.mrf.mxu1 }
 0xc31   : > { %2611 = vmatmul.mubr.msk.bf16.vlgmr.msra.gmra.mxu0 %vm652_vm3, %v1308_v46 }
 0xc32   : > { %v1404_v48 = vpop.f32.mrf.mxu1  ;;  %2622 = vmatprep.mubr.msk.bf16.mxu0 %vm2850_vm2, %v2849_v15 }
 0xc33   : > { %v1411_v49 = vsel %vm3018_vm6, %v1404_v48, -3.4028235e+38 }
 0xc34   : > { %v2618_v50 = vpop.f32.mrf.mxu1  ;;  %v1413_v51 = vsel %vm702_vm7, %v1411_v49, -inf }
 0xc35   : > { %1414 = vmax.xlane.f32.xlu1 %v1413_v51 }
 0xc36   : > { %v1407_v52 = vpop.f32.mrf.mxu1 }
 0xc37   : > { %v1412_v53 = vsel %vm3025_vm11, %v1407_v52, -3.4028235e+38 }
 0xc38   : > { %v2619_v54 = vpop.f32.mrf.mxu1  ;;  %v1416_v55 = vsel %vm706_vm10, %v1412_v53, -inf }
 0xc39   : > { %1417 = vmax.xlane.f32.xlu0 %v1416_v55 }
 0xc46   : > { %1436 = vrot.lane.b32.xlu1 %v3003_v41, %s2866_s28 }
 0xc4a   : > { %1537 = vrot.lane.b32.xlu1 %v3005_v44, %s2867_s16 }
 0xcbe   : > { %v1415_v57 = vpop.xlane.xlu1 %1414 }
 0xcbf   : > { %v1419_v58 = vsub.f32 %v1411_v49, %v1415_v57 }
 0xcc1   : > { %v1421_v59 = vmul.f32 1.442695, %v1419_v58 }
 0xcc2   : > { %v1437_v60 = vpop.permute.xlu1 %1436  ;;  %v1418_v62 = vpop.xlane.xlu0 %1417 }
 0xcc3   : > { %2799 = vpow2.f32 %v1421_v59  ;;  %v1442_v63 = vand.u32 %v1437_v60, %v3034_v6  ;;  %v1420_v0 = vsub.f32 %v1412_v53, %v1418_v62 }
 0xcc5   : > { %v1423_v1 = vmul.f32 1.442695, %v1420_v0  ;;  %2621 = vmatpush3.bf16.msra.mxu0 %v1442_v63 }
 0xcc6   : > { %2632 = vmatprep.subr.bf16.mxu0 %v2849_v15 }
 0xcc7   : > { %2801 = vpow2.f32 %v1423_v1 }
 0xcd0   : > { %v2800_v2 = vpop.eup %2799 }
 0xcd1   : > { %v1425_v3 = vsel %vm702_vm7, %v2800_v2, 0.0 }
 0xcd2   : > { %1426 = vadd.xlane.f32.xlu0 %v1425_v3 }
 0xcd4   : > { %v2802_v4 = vpop.eup %2801 }
 0xcd5   : > { %v1428_v5 = vsel %vm706_vm10, %v2802_v4, 0.0 }
 0xcd6   : > { %1429 = vadd.xlane.f32.xlu0 %v1428_v5 }
 0xcec   : > { %1539 = vrot.lane.b32.xlu0 %v3003_v41, %s2868_s17  ;;  %s2875_s17 = smov 36  }
 0xcf1   : > { %v1351_v7 = vpop.f32.mrf.mxu0 }
 0xcf2   : > { %v3174_v8 = vadd.f32 %v1351_v7, %v3136_v25  ;;  %v1538_v25 = vpop.permute.xlu1 %1537 }
 0xcf3   : > { %v2612_v9 = vpop.f32.mrf.mxu0 }
 0xcf5   : > { %v1354_v10 = vpop.f32.mrf.mxu0 }
 0xcf6   : > { %v3177_v11 = vadd.f32 %v1354_v10, %v3140_v29  ;;  %v1492_v29 = vsel %vm914_vm14, %v2436_v28, 0 }
 0xcf7   : > { %v2613_v13 = vpop.f32.mrf.mxu0  ;;  %2627 = vmatpush3.bf16.msra.mxu1 %v1492_v29 }
 0xcf8   : > { %2638 = vmatprep.subr.bf16.mxu1 %v2849_v15 }
 0xd5b   : > { %v1427_v16 = vpop.xlane.xlu0 %1426 }
 0xd5c   : > { %2803 = vrcp.f32 %v1427_v16 }
 0xd5f   : > { %v1430_v17 = vpop.xlane.xlu0 %1429 }
 0xd60   : > { %2805 = vrcp.f32 %v1430_v17 }
 0xd63   : > { %v1540_v24 = vpop.permute.xlu0 %1539 }
 0xd64   : > { %v1545_v27 = vsel %vm652_vm3, %v1540_v24, 0 }
 0xd69   : > { %v2804_v19 = vpop.eup %2803 }
 0xd6a   : > { %v1433_v22 = vmul.f32 %v2804_v19, %v2800_v2 }
 0xd6d   : > { %v2806_v21 = vpop.eup %2805 }
 0xd6e   : > { %v1434_v23 = vmul.f32 %v2806_v21, %v2802_v4 }
 0xd70   : > { %v1435_v26 = vpack.c.bf16 %v1434_v23, %v1433_v22 }
 0xd72   : > { %2623 = vmatmul.mubr.msk.bf16.vlgmr.msra.gmra.mxu0 %vm702_vm7, %v1435_v26 }
 0xd73   : > { %2633 = vmatpush3.bf16.xpose.msra.mxu0 %v1545_v27  ;;  %2634 = vmatprep.mubr.msk.bf16.mxu0 %vm2850_vm2, %v2849_v15 }
 0xd74   : > { %2644 = vmatprep.subr.bf16.mxu0 %v2849_v15 }
 0xd7a   : > { %2635 = vmatmul.mubr.msk.bf16.vlgmr.msra.gmra.mxu0 %vm652_vm3, %v1538_v25 }
 0xd7b   : > { %2646 = vmatprep.mubr.msk.bf16.mxu0 %vm2850_vm2, %v2849_v15 }
 0xe32   : > { %v1478_v30 = vpop.f32.mrf.mxu0 }
 0xe34   : > { %v2624_v31 = vpop.f32.mrf.mxu0 }
 0xe36   : > { %v1481_v32 = vpop.f32.mrf.mxu0 }
 0xe37   : > { %v1485_v33 = vpack.c.bf16 %v1481_v32, %v1478_v30 }
 0xe38   : > { %v2625_v34 = vpop.f32.mrf.mxu0 }
 0xe39   : > { %2629 = vmatmul.mubr.msk.bf16.vlgmr.msra.gmra.mxu1 %vm652_vm3, %v1485_v33 }
 0xe3a   : > { %v1581_v12 = vpop.f32.mrf.mxu0  ;;  %2640 = vmatprep.mubr.msk.bf16.mxu1 %vm2850_vm2, %v2849_v15 }
 0xe3b   : > { %v1588_v18 = vsel %vm3018_vm6, %v1581_v12, -3.4028235e+38 }
 0xe3c   : > { %v2636_v35 = vpop.f32.mrf.mxu0  ;;  %v1590_v36 = vsel %vm702_vm7, %v1588_v18, -inf }
 0xe3d   : > { %1591 = vmax.xlane.f32.xlu1 %v1590_v36 }
 0xe3e   : > { %v1584_v37 = vpop.f32.mrf.mxu0 }
 0xe3f   : > { %v1589_v14 = vsel %vm3025_vm11, %v1584_v37, -3.4028235e+38 }
 0xe40   : > { %v2637_v20 = vpop.f32.mrf.mxu0  ;;  %v1593_v38 = vsel %vm706_vm10, %v1589_v14, -inf }
 0xe41   : > { %1594 = vmax.xlane.f32.xlu0 %v1593_v38 }
 0xec6   : > { %v1592_v39 = vpop.xlane.xlu1 %1591 }
 0xec7   : > { %v1596_v40 = vsub.f32 %v1588_v18, %v1592_v39 }
 0xec9   : > { %v1598_v42 = vmul.f32 1.442695, %v1596_v40 }
 0xeca   : > { %v1595_v43 = vpop.xlane.xlu0 %1594 }
 0xecb   : > { %2807 = vpow2.f32 %v1598_v42  ;;  %v1597_v45 = vsub.f32 %v1589_v14, %v1595_v43 }
 0xecd   : > { %v1600_v46 = vmul.f32 1.442695, %v1597_v45 }
 0xecf   : > { %2809 = vpow2.f32 %v1600_v46 }
 0xed8   : > { %v2808_v47 = vpop.eup %2807 }
 0xed9   : > { %v1602_v48 = vsel %vm702_vm7, %v2808_v47, 0.0 }
 0xeda   : > { %1603 = vadd.xlane.f32.xlu0 %v1602_v48 }
 0xedc   : > { %v2810_v49 = vpop.eup %2809 }
 0xedd   : > { %v1605_v50 = vsel %vm706_vm10, %v2810_v49, 0.0 }
 0xede   : > { %1606 = vadd.xlane.f32.xlu1 %v1605_v50 }
 0xeef   : > { %1716 = vrot.lane.b32.xlu1 %v3003_v41, %s2869_s21 }
 0xef0   : > { %1613 = vrot.lane.b32.xlu0 %v3003_v41, %s2870_s30 }
 0xef3   : > { %1714 = vrot.lane.b32.xlu1 %v3005_v44, %s2871_s22 }
 0xef9   : > { %v1528_v51 = vpop.f32.mrf.mxu1 }
 0xefa   : > { %v3207_v52 = vadd.f32 %v1528_v51, %v3174_v8  ;;  %v2440_v8 = vld [vmem:[%s3368_s6 + $0xa] sm:$0x3] }
 0xefb   : > { %v2630_v53 = vpop.f32.mrf.mxu1  ;;  %v1669_v9 = vsel %vm914_vm14, %v2440_v8, 0 }
 0xefc   : > { %2645 = vmatpush3.bf16.msra.mxu0 %v1669_v9  ;;  %v2444_v53 = vld [vmem:[%s3368_s6 + $0xc] sm:$0x3] }
 0xefd   : > { %v1531_v54 = vpop.f32.mrf.mxu1  ;;  %2656 = vmatprep.subr.bf16.mxu0 %v2849_v15 }
 0xefe   : > { %v3210_v55 = vadd.f32 %v1531_v54, %v3177_v11  ;;  %v1846_v54 = vsel %vm914_vm14, %v2444_v53, 0 }
 0xeff   : > { %v2631_v57 = vpop.f32.mrf.mxu1 }
 0xf63   : > { %v1604_v58 = vpop.xlane.xlu0 %1603 }
 0xf64   : > { %2811 = vrcp.f32 %v1604_v58 }
 0xf67   : > { %v1607_v59 = vpop.xlane.xlu1 %1606  ;;  %v1614_v60 = vpop.permute.xlu0 %1613 }
 0xf68   : > { %2813 = vrcp.f32 %v1607_v59  ;;  %v1619_v62 = vand.u32 %v1614_v60, %v3034_v6 }
 0xf6a   : > { %2639 = vmatpush3.bf16.msra.mxu1 %v1619_v62 }
 0xf6b   : > { %2650 = vmatprep.subr.bf16.mxu1 %v2849_v15  ;;  %v1717_v3 = vpop.permute.xlu1 %1716 }
 0xf6c   : > { %v1722_v5 = vsel %vm652_vm3, %v1717_v3, 0 }
 0xf6f   : > { %v1715_v7 = vpop.permute.xlu1 %1714 }
 0xf71   : > { %v2812_v63 = vpop.eup %2811 }
 0xf72   : > { %v1610_v1 = vmul.f32 %v2812_v63, %v2808_v47 }
 0xf75   : > { %v2814_v0 = vpop.eup %2813 }
 0xf76   : > { %v1611_v2 = vmul.f32 %v2814_v0, %v2810_v49 }
 0xf78   : > { %v1612_v4 = vpack.c.bf16 %v1611_v2, %v1610_v1 }
 0xf7a   : > { %2641 = vmatmul.mubr.msk.bf16.vlgmr.msra.gmra.mxu1 %vm702_vm7, %v1612_v4 }
 0xf7b   : > { %2651 = vmatpush3.bf16.xpose.msra.mxu1 %v1722_v5  ;;  %2652 = vmatprep.mubr.msk.bf16.mxu1 %vm2850_vm2, %v2849_v15 }
 0xf7c   : > { %2662 = vmatprep.subr.bf16.mxu1 %v2849_v15 }
 0xf82   : > { %2653 = vmatmul.mubr.msk.bf16.vlgmr.msra.gmra.mxu1 %vm652_vm3, %v1715_v7 }
 0xf83   : > { %2664 = vmatprep.mubr.msk.bf16.mxu1 %vm2850_vm2, %v2849_v15  ;;  %2663 = vmatpush3.bf16.msra.mxu1 %v1846_v54 }
 0xf84   : > { %2674 = vmatprep.subr.bf16.mxu1 %v2849_v15 }
0x103a   : > { %v1655_v10 = vpop.f32.mrf.mxu1 }
0x103c   : > { %v2642_v11 = vpop.f32.mrf.mxu1 }
0x103e   : > { %v1658_v13 = vpop.f32.mrf.mxu1 }
0x103f   : > { %v1662_v16 = vpack.c.bf16 %v1658_v13, %v1655_v10 }
0x1040   : > { %v2643_v17 = vpop.f32.mrf.mxu1 }
0x1041   : > { %2647 = vmatmul.mubr.msk.bf16.vlgmr.msra.gmra.mxu0 %vm652_vm3, %v1662_v16 }
0x1042   : > { %v1758_v19 = vpop.f32.mrf.mxu1  ;;  %2658 = vmatprep.mubr.msk.bf16.mxu0 %vm2850_vm2, %v2849_v15 }
0x1043   : > { %v1765_v21 = vsel %vm3018_vm6, %v1758_v19, -3.4028235e+38 }
0x1044   : > { %v2654_v22 = vpop.f32.mrf.mxu1  ;;  %v1767_v23 = vsel %vm702_vm7, %v1765_v21, -inf }
0x1045   : > { %1768 = vmax.xlane.f32.xlu1 %v1767_v23 }
0x1046   : > { %v1761_v24 = vpop.f32.mrf.mxu1 }
0x1047   : > { %v1766_v26 = vsel %vm3025_vm11, %v1761_v24, -3.4028235e+38 }
0x1048   : > { %v2655_v27 = vpop.f32.mrf.mxu1  ;;  %v1770_v25 = vsel %vm706_vm10, %v1766_v26, -inf }
0x1049   : > { %1771 = vmax.xlane.f32.xlu0 %v1770_v25 }
0x1056   : > { %1790 = vrot.lane.b32.xlu1 %v3003_v41, %s2872_s25 }
0x105a   : > { %1891 = vrot.lane.b32.xlu1 %v3005_v44, %s2873_s26 }
0x10ce   : > { %v1769_v28 = vpop.xlane.xlu1 %1768 }
0x10cf   : > { %v1773_v29 = vsub.f32 %v1765_v21, %v1769_v28 }
0x10d1   : > { %v1775_v30 = vmul.f32 1.442695, %v1773_v29 }
0x10d2   : > { %v1791_v31 = vpop.permute.xlu1 %1790  ;;  %v1772_v32 = vpop.xlane.xlu0 %1771 }
0x10d3   : > { %2815 = vpow2.f32 %v1775_v30  ;;  %v1796_v33 = vand.u32 %v1791_v31, %v3034_v6  ;;  %v1774_v34 = vsub.f32 %v1766_v26, %v1772_v32 }
0x10d5   : > { %v1777_v12 = vmul.f32 1.442695, %v1774_v34  ;;  %2657 = vmatpush3.bf16.msra.mxu0 %v1796_v33  ;;  %v2448_v34 = vld [vmem:[%s3368_s6 + $0xe] sm:$0x3] }
0x10d6   : > { %2668 = vmatprep.subr.bf16.mxu0 %v2849_v15 }
0x10d7   : > { %2817 = vpow2.f32 %v1777_v12 }
0x10e0   : > { %v2816_v18 = vpop.eup %2815 }
0x10e1   : > { %v1779_v35 = vsel %vm702_vm7, %v2816_v18, 0.0 }
0x10e2   : > { %1780 = vadd.xlane.f32.xlu0 %v1779_v35 }
0x10e4   : > { %v2818_v36 = vpop.eup %2817 }
0x10e5   : > { %v1782_v44 = vsel %vm706_vm10, %v2818_v36, 0.0 }
0x10e6   : > { %1783 = vadd.xlane.f32.xlu0 %v1782_v44 }
0x10fc   : > { %1893 = vrot.lane.b32.xlu0 %v3003_v41, %s2874_s27 }
0x1101   : > { %v1705_v37 = vpop.f32.mrf.mxu0 }
0x1102   : > { %v1712_v14 = vadd.f32 %v1705_v37, %v3207_v52  ;;  %v1892_v52 = vpop.permute.xlu1 %1891 }
0x1103   : > { %v2648_v20 = vpop.f32.mrf.mxu0 }
0x1104   : > { %v2450_v20 = vld [vmem:[%s3369_s7] ss:$0 sm:$0xff] }
0x1105   : > { %v1708_v38 = vpop.f32.mrf.mxu0 }
0x1106   : > { %v1713_v39 = vadd.f32 %v1708_v38, %v3210_v55 }
0x1107   : > { %v2649_v40 = vpop.f32.mrf.mxu0 }
0x116b   : > { %v1781_v42 = vpop.xlane.xlu0 %1780 }
0x116c   : > { %2819 = vrcp.f32 %v1781_v42 }
0x116f   : > { %v1784_v43 = vpop.xlane.xlu0 %1783 }
0x1170   : > { %2821 = vrcp.f32 %v1784_v43 }
0x1173   : > { %v1894_v49 = vpop.permute.xlu0 %1893 }
0x1174   : > { %v1899_v51 = vsel %vm652_vm3, %v1894_v49, 0 }
0x1179   : > { %v2820_v45 = vpop.eup %2819 }
0x117a   : > { %v1787_v47 = vmul.f32 %v2820_v45, %v2816_v18 }
0x117d   : > { %v2822_v46 = vpop.eup %2821 }
0x117e   : > { %v1788_v48 = vmul.f32 %v2822_v46, %v2818_v36 }
0x1180   : > { %v1789_v50 = vpack.c.bf16 %v1788_v48, %v1787_v47  ;;  %v2840_v47 = vld [vmem:[%s2968_s18 + $0x8] sm:$0x1] }
0x1182   : > { %2659 = vmatmul.mubr.msk.bf16.vlgmr.msra.gmra.mxu0 %vm702_vm7, %v1789_v50 }
0x1183   : > { %2669 = vmatpush3.bf16.xpose.msra.mxu0 %v1899_v51  ;;  %2670 = vmatprep.mubr.msk.bf16.mxu0 %vm2850_vm2, %v2849_v15 }
0x1184   : > { %2680 = vmatprep.subr.bf16.mxu0 %v2849_v15 }
0x118a   : > { %2671 = vmatmul.mubr.msk.bf16.vlgmr.msra.gmra.mxu0 %vm652_vm3, %v1892_v52 }
0x118b   : > { %2682 = vmatprep.mubr.msk.bf16.mxu0 %vm2850_vm2, %v2849_v15 }
0x1242   : > { %v1832_v55 = vpop.f32.mrf.mxu0 }
0x1244   : > { %v2660_v57 = vpop.f32.mrf.mxu0 }
0x1246   : > { %v1835_v58 = vpop.f32.mrf.mxu0 }
0x1247   : > { %v1839_v59 = vpack.c.bf16 %v1835_v58, %v1832_v55 }
0x1248   : > { %v2661_v60 = vpop.f32.mrf.mxu0 }
0x1249   : > { %2665 = vmatmul.mubr.msk.bf16.vlgmr.msra.gmra.mxu1 %vm652_vm3, %v1839_v59 }
0x124a   : > { %v1935_v62 = vpop.f32.mrf.mxu0  ;;  %2676 = vmatprep.mubr.msk.bf16.mxu1 %vm2850_vm2, %v2849_v15 }
0x124b   : > { %v1942_v63 = vsel %vm3018_vm6, %v1935_v62, -3.4028235e+38 }
0x124c   : > { %v2672_v0 = vpop.f32.mrf.mxu0  ;;  %v1944_v1 = vsel %vm702_vm7, %v1942_v63, -inf }
0x124d   : > { %1945 = vmax.xlane.f32.xlu1 %v1944_v1  ;;  %v2753_v0 = vld [vmem:[%s3372_s10 + $0x8] sm:$0xff]   ;;  %v2754_v1 = vld [vmem:[%s3372_s10] sm:$0xff]  }
0x124e   : > { %v1938_v2 = vpop.f32.mrf.mxu0 }
0x124f   : > { %v1943_v3 = vsel %vm3025_vm11, %v1938_v2, -3.4028235e+38 }
0x1250   : > { %v2673_v4 = vpop.f32.mrf.mxu0  ;;  %v1947_v5 = vsel %vm706_vm10, %v1943_v3, -inf }
0x1251   : > { %1948 = vmax.xlane.f32.xlu0 %v1947_v5 }
0x12d6   : > { %v1946_v7 = vpop.xlane.xlu1 %1945 }
0x12d7   : > { %v1950_v8 = vsub.f32 %v1942_v63, %v1946_v7 }
0x12d9   : > { %v1952_v9 = vmul.f32 1.442695, %v1950_v8 }
0x12da   : > { %v1949_v10 = vpop.xlane.xlu0 %1948 }
0x12db   : > { %2823 = vpow2.f32 %v1952_v9  ;;  %v1951_v11 = vsub.f32 %v1943_v3, %v1949_v10 }
0x12dd   : > { %v1954_v56 = vmul.f32 1.442695, %v1951_v11  ;;  %v2451_v11 = vld [vmem:[%s3370_s8] ss:$0 sm:$0xff] }
0x12df   : > { %2825 = vpow2.f32 %v1954_v56 }
0x12e8   : > { %v2824_v13 = vpop.eup %2823 }
0x12e9   : > { %v1956_v16 = vsel %vm702_vm7, %v2824_v13, 0.0 }
0x12ea   : > { %1957 = vadd.xlane.f32.xlu0 %v1956_v16 }
0x12ec   : > { %v2826_v17 = vpop.eup %2825 }
0x12ed   : > { %v1959_v61 = vsel %vm706_vm10, %v2826_v17, 0.0 }
0x12ee   : > { %1960 = vadd.xlane.f32.xlu1 %v1959_v61 }
0x1300   : > { %1967 = vrot.lane.b32.xlu0 %v3003_v41, %s2875_s17 }
0x1309   : > { %v1882_v19 = vpop.f32.mrf.mxu1 }
0x130a   : > { %v1889_v21 = vadd.f32 %v1882_v19, %v1712_v14 }
0x130b   : > { %v2666_v22 = vpop.f32.mrf.mxu1 }
0x130d   : > { %v1885_v23 = vpop.f32.mrf.mxu1 }
0x130e   : > { %v1890_v24 = vadd.f32 %v1885_v23, %v1713_v39  ;;  %v2839_v39 = vld [vmem:[%s2968_s18] sm:$0xff]  ;;  %v2755_v23 = vld [vmem:[%s3374_s12 + $0x38] sm:$0xff]  }
0x130f   : > { %v2667_v26 = vpop.f32.mrf.mxu1 }
0x1310   : > { %v2757_v26 = vld [vmem:[%s3374_s12 + $0x28] sm:$0xff]  }
0x1373   : > { %v1958_v27 = vpop.xlane.xlu0 %1957 }
0x1374   : > { %2827 = vrcp.f32 %v1958_v27  ;;  %v2758_v27 = vld [vmem:[%s3374_s12 + $0x20] sm:$0xff]  }
0x1377   : > { %v1961_v25 = vpop.xlane.xlu1 %1960  ;;  %v1968_v28 = vpop.permute.xlu0 %1967 }
0x1378   : > { %2829 = vrcp.f32 %v1961_v25  ;;  %v1973_v29 = vand.u32 %v1968_v28, %v3034_v6  ;;  %v2023_v6 = vsel %vm914_vm14, %v2448_v34, 0  ;;  %v2759_v25 = vld [vmem:[%s3374_s12 + $0x18] sm:$0xff]   ;;  %v2760_v28 = vld [vmem:[%s3374_s12 + $0x10] sm:$0xff]  }
0x1379   : > { %2681 = vmatpush3.bf16.msra.mxu0 %v2023_v6 }
0x137a   : > { %2675 = vmatpush3.bf16.msra.mxu1 %v1973_v29  ;;  %2694 = vmatprep.subr.bf16.mxu0 %v2849_v15  ;;  %v2761_v29 = vld [vmem:[%s3374_s12 + $0x8] sm:$0xff]  }
0x137b   : > { %2686 = vmatprep.subr.bf16.mxu1 %v2849_v15 }
0x1381   : > { %v2828_v30 = vpop.eup %2827 }
0x1382   : > { %v1964_v32 = vmul.f32 %v2828_v30, %v2824_v13  ;;  %v2762_v30 = vld [vmem:[%s3374_s12] sm:$0xff]  }
0x1385   : > { %v2830_v31 = vpop.eup %2829 }
0x1386   : > { %v1965_v41 = vmul.f32 %v2830_v31, %v2826_v17  ;;  %v2452_v17 = vld [vmem:[%s3371_s9] ss:$0 sm:$0xff] }
0x1387   : > { %v2453_v31 = vld [vmem:[%s3373_s11] ss:$0 sm:$0xff] }
0x1388   : > { %v1966_v33 = vpack.c.bf16 %v1965_v41, %v1964_v32 }
0x138a   : > { %2677 = vmatmul.mubr.msk.bf16.vlgmr.msra.gmra.mxu1 %vm702_vm7, %v1966_v33 }
0x138b   : > { %2690 = vmatprep.mubr.msk.bf16.mxu1 %vm2850_vm2, %v2849_v15  ;;  %2687 = vmatpush3.bf16.msra.mxu1 %v2753_v0 }
0x138c   : > { %2688 = vmatprep.subr.bf16.mxu1 %v2849_v15 }
0x138f   : > { %2689 = vmatpush3.bf16.msra.mxu1 %v2754_v1 }
0x144a   : > { %v2009_v12 = vpop.f32.mrf.mxu1 }
0x144c   : > { %v2678_v18 = vpop.f32.mrf.mxu1 }
0x144e   : > { %v2012_v35 = vpop.f32.mrf.mxu1 }
0x144f   : > { %v2016_v36 = vpack.c.bf16 %v2012_v35, %v2009_v12 }
0x1450   : > { %v2679_v44 = vpop.f32.mrf.mxu1 }
0x1451   : > { %2683 = vmatmul.mubr.msk.bf16.vlgmr.msra.gmra.mxu0 %vm652_vm3, %v2016_v36 }
0x1452   : > { %2710 = vmatprep.mubr.msk.bf16.mxu0 %vm2850_vm2, %v2849_v15  ;;  %2695 = vmatpush3.bf16.msra.mxu0 %v2755_v23 }
0x1453   : > { %2696 = vmatprep.subr.bf16.mxu0 %v2849_v15 }
0x1511   : > { %v2059_v37 = vpop.f32.mrf.mxu0 }
0x1512   : > { %v2066_v14 = vadd.f32 %v2059_v37, %v1889_v21 }
0x1513   : > { %v2684_v38 = vpop.f32.mrf.mxu0 }
0x1514   : > { %v2068_v40 = vadd.f32 %v2839_v39, %v2066_v14 }
0x1515   : > { %v2062_v42 = vpop.f32.mrf.mxu0 }
0x1516   : > { %v3287_v43 = vadd.f32 %v2450_v20, %v2068_v40  ;;  %v2067_v45 = vadd.f32 %v2062_v42, %v1890_v24  ;;  %v2756_v24 = vld [vmem:[%s3374_s12 + $0x30] sm:$0xff]  }
0x1517   : > { %v2685_v46 = vpop.f32.mrf.mxu0  ;;  %2697 = vmatpush3.bf16.msra.mxu0 %v2756_v24 }
0x1518   : > { %v2069_v48 = vadd.f32 %v2840_v47, %v2067_v45  ;;  %v2079_v49 = vsel %vm505_vm0, %v3287_v43, 0.0  ;;  %2698 = vmatprep.subr.bf16.mxu0 %v2849_v15 }
0x1519   : > { %2080 = vadd.xlane.f32.xlu1 %v2079_v49 }
0x151a   : > { %v3292_v50 = vadd.f32 %v2450_v20, %v2069_v48 }
0x151b   : > { %2699 = vmatpush3.bf16.msra.mxu0 %v2757_v26 }
0x151c   : > { %v2082_v51 = vsel %vm509_vm1, %v3292_v50, 0.0  ;;  %2700 = vmatprep.subr.bf16.mxu0 %v2849_v15 }
0x151d   : > { %2083 = vadd.xlane.f32.xlu1 %v2082_v51 }
0x151f   : > { %2701 = vmatpush3.bf16.msra.mxu0 %v2758_v27 }
0x1520   : > { %2702 = vmatprep.subr.bf16.mxu0 %v2849_v15 }
0x1523   : > { %2703 = vmatpush3.bf16.msra.mxu0 %v2759_v25 }
0x1524   : > { %2704 = vmatprep.subr.bf16.mxu0 %v2849_v15 }
0x1527   : > { %2705 = vmatpush3.bf16.msra.mxu0 %v2760_v28 }
0x1528   : > { %2706 = vmatprep.subr.bf16.mxu0 %v2849_v15 }
0x152b   : > { %2707 = vmatpush3.bf16.msra.mxu0 %v2761_v29 }
0x152c   : > { %2708 = vmatprep.subr.bf16.mxu0 %v2849_v15 }
0x152f   : > { %2709 = vmatpush3.bf16.msra.mxu0 %v2762_v30 }
0x15a2   : > { %v2081_v52 = vpop.xlane.xlu1 %2080 }
0x15a3   : > { %v2085_v53 = vmul.f32 0.03125, %v2081_v52 }
0x15a5   : > { %v2087_v54 = vsub.f32 %v3287_v43, %v2085_v53  ;;  %v2457_v53 = vld [vmem:[%s3375_s13] ss:$0 sm:$0xff] }
0x15a6   : > { %v2084_v55 = vpop.xlane.xlu1 %2083 }
0x15a7   : > { %v2086_v57 = vmul.f32 0.03125, %v2084_v55  ;;  %v2089_v58 = vmul.f32 %v2087_v54, %v2087_v54 }
0x15a9   : > { %v2088_v59 = vsub.f32 %v3292_v50, %v2086_v57  ;;  %v2091_v60 = vsel %vm505_vm0, %v2089_v58, 0.0 }
0x15aa   : > { %2092 = vadd.xlane.f32.xlu1 %v2091_v60 }
0x15ab   : > { %v2090_v62 = vmul.f32 %v2088_v59, %v2088_v59 }
0x15ad   : > { %v2094_v63 = vsel %vm509_vm1, %v2090_v62, 0.0 }
0x15ae   : > { %2095 = vadd.xlane.f32.xlu1 %v2094_v63 }
0x1633   : > { %v2093_v2 = vpop.xlane.xlu1 %2092 }
0x1634   : > { %v2097_v3 = vmul.f32 0.03125, %v2093_v2 }
0x1636   : > { %v2099_v4 = vadd.f32 1e-05, %v2097_v3 }
0x1637   : > { %v2096_v5 = vpop.xlane.xlu1 %2095 }
0x1638   : > { %2831 = vrsqrt.f32 %v2099_v4  ;;  %v2098_v7 = vmul.f32 0.03125, %v2096_v5 }
0x163a   : > { %v2100_v8 = vadd.f32 1e-05, %v2098_v7 }
0x163c   : > { %2833 = vrsqrt.f32 %v2100_v8 }
0x1645   : > { %v2832_v9 = vpop.eup %2831 }
0x1646   : > { %v2103_v10 = vmul.f32 %v2832_v9, %v2087_v54 }
0x1648   : > { %v2112_v16 = vmul.f32 %v2451_v11, %v2103_v10 }
0x1649   : > { %v2834_v56 = vpop.eup %2833 }
0x164a   : > { %v2104_v13 = vmul.f32 %v2834_v56, %v2088_v59  ;;  %v2121_v19 = vadd.f32 %v2452_v17, %v2112_v16 }
0x164c   : > { %v2113_v61 = vmul.f32 %v2451_v11, %v2104_v13 }
0x164e   : > { %v2122_v21 = vadd.f32 %v2452_v17, %v2113_v61 }
0x1650   : > { %v2123_v22 = vpack.c.bf16 %v2122_v21, %v2121_v19 }
0x1652   : > { %2691 = vmatmul.mubr.msk.bf16.vlgmr.msra.gmra.mxu1 %vm505_vm0, %v2123_v22 }
0x1712   : > { %v2184_v32 = vpop.f32.mrf.mxu1 }
0x1713   : > { %v2185_v41 = vadd.f32 %v2453_v31, %v2184_v32 }
0x1714   : > { %v2692_v33 = vpop.f32.mrf.mxu1 }
0x1715   : > { %v2191_v34 = vmul.f32 %v2185_v41, %v2185_v41 }
0x1716   : > { %v2187_v6 = vpop.f32.mrf.mxu1 }
0x1717   : > { %v2193_v12 = vmul.f32 %v2191_v34, %v2185_v41  ;;  %v2188_v18 = vadd.f32 %v2453_v31, %v2187_v6 }
0x1718   : > { %v2693_v35 = vpop.f32.mrf.mxu1 }
0x1719   : > { %v2195_v36 = vmul.f32 0.044715, %v2193_v12  ;;  %v2192_v44 = vmul.f32 %v2188_v18, %v2188_v18 }
0x171b   : > { %v2197_v15 = vadd.f32 %v2195_v36, %v2185_v41  ;;  %v2194_v37 = vmul.f32 %v2192_v44, %v2188_v18 }
0x171d   : > { %v2199_v14 = vmul.f32 0.7978846, %v2197_v15  ;;  %v2196_v20 = vmul.f32 0.044715, %v2194_v37 }
0x171f   : > { %2835 = vtanh.f32 %v2199_v14  ;;  %v2198_v38 = vadd.f32 %v2196_v20, %v2188_v18 }
0x1721   : > { %v2200_v39 = vmul.f32 0.7978846, %v2198_v38 }
0x1723   : > { %2837 = vtanh.f32 %v2200_v39 }
0x172c   : > { %v2836_v40 = vpop.eup %2835 }
0x172d   : > { %v2203_v42 = vadd.f32 1.0, %v2836_v40 }
0x172f   : > { %v2205_v46 = vmul.f32 0.5, %v2203_v42 }
0x1730   : > { %v2838_v45 = vpop.eup %2837 }
0x1731   : > { %v2204_v47 = vadd.f32 1.0, %v2838_v45  ;;  %v2207_v49 = vmul.f32 %v2205_v46, %v2185_v41 }
0x1733   : > { %v2206_v48 = vmul.f32 0.5, %v2204_v47 }
0x1735   : > { %v2208_v51 = vmul.f32 %v2206_v48, %v2188_v18 }
0x1737   : > { %v2209_v52 = vpack.c.bf16 %v2208_v51, %v2207_v49 }
0x1739   : > { %2711 = vmatmul.mubr.bf16.vlgmr.msra.gmra.mxu0 %v2209_v52 }
0x17f9   : > { %v2315_v54 = vpop.f32.mrf.mxu0 }
0x17fa   : > { %v2316_v55 = vadd.f32 %v2457_v53, %v2315_v54 }
0x17fb   : > { %v2712_v57 = vpop.f32.mrf.mxu0 }
0x17fc   : > { %v2322_v58 = vadd.f32 %v2316_v55, %v3287_v43 }
0x17fd   : > { %v2318_v59 = vpop.f32.mrf.mxu0 }
0x17fe   : > { %2324 = vst.msk [vmem:[%s501_s23] sm:$0xff] %vm505_vm0, %v2322_v58  ;;  %v2319_v60 = vadd.f32 %v2457_v53, %v2318_v59 }
0x17ff   : > { %v2713_v62 = vpop.f32.mrf.mxu0 }
0x1800   : > { %v2323_v63 = vadd.f32 %v2319_v60, %v3292_v50 }
0x1802   : > { %2325 = vst.msk [vmem:[%s501_s23 + $0x8] sm:$0x1] %vm509_vm1, %v2323_v63 }
0x1803 PF: > { %s24_s29 = sadd.s32 1, %s2847_s29  }
0x1804   : > { %p21_p4 = scmp.ge.s32.totalorder %s24_s29, 4  }
0x1806   :  { %23 = sbr.rel (!%p21_p4) target bundleno = 1 (0x1), region = 119 }

</bundles_post_ra>
